<compile_context>
chip_gen: v7x
topology: tpu7x:2x2x1
jax: 0.10.0
libtpu: 0.0.40
codegen_flags: <defaults>
</compile_context>

<pallas_src>
import jax
import jax.numpy as jnp
from jax import lax
from jax.experimental import pallas as pl
from jax.experimental.pallas import tpu as pltpu


# ----------------------------------------------------------------------------
# small helpers (wrapper side)
# ----------------------------------------------------------------------------
def _round_up(x, m):
    return (x + m - 1) // m * m


def _invconv_weight(p, C):
    l_mask = jnp.tril(jnp.ones((C, C), jnp.float32), -1)
    u_mask = l_mask.T
    return (p['ic_wp']
            @ (p['ic_wl'] * l_mask + jnp.eye(C, dtype=jnp.float32))
            @ (p['ic_wu'] * u_mask + jnp.diag(p['ic_sign'] * jnp.exp(p['ic_ws']))))


def _stack_taps(w_oihw):
    # (O, I, 3, 3) -> (O, 9*I), tap-major (kh*3+kw), then input channel.
    return jnp.transpose(w_oihw, (0, 2, 3, 1)).reshape(w_oihw.shape[0], -1)


def _boundary_masks(H, W):
    # masks[kh*3+kw, h*W+w] = 1.0 iff input pixel (h+kh-1, w+kw-1) lies inside the image.
    hh = jnp.arange(H).reshape(H, 1)
    ww = jnp.arange(W).reshape(1, W)
    rows = []
    for kh in range(3):
        for kw in range(3):
            inside = ((hh + kh - 1 >= 0) & (hh + kh - 1 < H) &
                      (ww + kw - 1 >= 0) & (ww + kw - 1 < W))
            rows.append(inside.astype(jnp.float32).reshape(1, H * W))
    return jnp.concatenate(rows, axis=0)                      # (9, HW)


# ----------------------------------------------------------------------------
# Fused flow step: wrapper (weight folding / packing) + one pallas_call
# ----------------------------------------------------------------------------
def flow_forward(p, x_nchw, xc_nchw, mxu_dtype=jnp.float32):
    N, C, H, W = x_nchw.shape
    Cc = xc_nchw.shape[1]
    Ch = C // 2
    Cm = p['inj_w1'].shape[0]
    HW = H * W
    f32 = jnp.float32

    # NCHW is already channel-major -> pure reshapes, no transpose / pad in the wrapper.
    x = x_nchw.reshape(N, C, HW).astype(f32)
    xc = xc_nchw.reshape(N, Cc, HW).astype(f32)

    masks = _boundary_masks(H, W)                             # (9, HW)

    # --- ActNorm folded into InvConv 1x1:  z = (Wcc*scale) @ x + (Wcc*scale) @ loc
    wcc = _invconv_weight(p, C)
    wmix = wcc * p['an_scale'][None, :]                       # (C, C)
    bmix = wmix @ p['an_loc']                                 # (C,)
    wm = jnp.concatenate([wmix, bmix[:, None]], axis=1).astype(f32)   # (C, C+1)

    # --- stage-weight slab (Cm rows).  K dims padded to multiples of 8.
    K1i = _round_up(9 * Cc, 8)
    K1c = _round_up(9 * (Ch + Cc), 8)
    Kz = _round_up(9 * Cm, 8)

    def pad_k(w, k):
        return jnp.pad(w, ((0, 0), (0, k - w.shape[1])))

    wa = jnp.concatenate(
        [pad_k(_stack_taps(p['inj_w1']), K1i), p['inj_b1'][:, None],
         p['inj_w2'].reshape(Cm, Cm), p['inj_b2'][:, None],
         pad_k(_stack_taps(p['cp_w1']), K1c), p['cp_b1'][:, None],
         p['cp_w2'].reshape(Cm, Cm), p['cp_b2'][:, None]], axis=1).astype(f32)
    # static column offsets inside `wa`
    o_w1i = 0
    o_b1i = o_w1i + K1i
    o_w2i = o_b1i + 1
    o_b2i = o_w2i + Cm
    o_w1c = o_b2i + 1
    o_b1c = o_w1c + K1c
    o_w2c = o_b1c + 1
    o_b2c = o_w2c + Cm
    wa_cols = o_b2c + 1

    # --- ZeroConv2d: exp(3*scale) folded into weights; ones-padding + bias folded into
    #     a per-pixel bias slab (constant border contribution precomputed here).
    def zero_conv_prep(w, b, s3):
        g = jnp.exp(3.0 * s3)                                 # (O,)
        w_eff = w * g[:, None, None, None]                    # (O, I, 3, 3)
        w_stack = pad_k(_stack_taps(w_eff), Kz)               # (O, Kz)
        tap_sum = jnp.sum(w_eff, axis=1).reshape(w.shape[0], 9)
        bias_slab = (b * g)[:, None] + tap_sum @ (1.0 - masks)   # (O, HW)
        return w_stack, bias_slab

    w3i, bias3i = zero_conv_prep(p['inj_w3'], p['inj_b3'], p['inj_s3'])   # (2C, .)
    w3c, bias3c = zero_conv_prep(p['cp_w3'], p['cp_b3'], p['cp_s3'])      # (C, .)
    wz = jnp.concatenate([w3i, w3c], axis=0).astype(f32)                  # (3C, Kz)
    pp = jnp.concatenate([masks, bias3i, bias3c], axis=0).astype(f32)     # (9+3C, HW)

    # ------------------------------------------------------------------ kernel
    def kernel(x_ref, xc_ref, wm_ref, wa_ref, wz_ref, pp_ref, out_ref, ld_ref):
        x2d = x_ref[0]                                        # (C, HW)
        xc2d = xc_ref[0]                                      # (Cc, HW)

        ppv = pp_ref[...]
        tap_masks = [ppv[k:k + 1, :] for k in range(9)]       # 9 x (1, HW)
        b3i = ppv[9:9 + 2 * C, :]                             # (2C, HW)
        b3c = ppv[9 + 2 * C:9 + 3 * C, :]                     # (C, HW)

        wav = wa_ref[...]
        w1i_ = wav[:, o_w1i:o_w1i + K1i]
        b1i_ = wav[:, o_b1i:o_b1i + 1]
        w2i_ = wav[:, o_w2i:o_w2i + Cm]
        b2i_ = wav[:, o_b2i:o_b2i + 1]
        w1c_ = wav[:, o_w1c:o_w1c + K1c]
        b1c_ = wav[:, o_b1c:o_b1c + 1]
        w2c_ = wav[:, o_w2c:o_w2c + Cm]
        b2c_ = wav[:, o_b2c:o_b2c + 1]

        wzv = wz_ref[...]
        w3i_ = wzv[:2 * C, :]
        w3c_ = wzv[2 * C:3 * C, :]

        def mm(a, b):
            return jnp.dot(a.astype(mxu_dtype), b.astype(mxu_dtype),
                           preferred_element_type=f32)

        def taps(a, k_target):
            # (Cin, HW) -> (k_target, HW): 9 shifted taps via XLU rolls + boundary
            # masks (== zero padding), stacked along K, zero-padded to k_target rows.
            pieces = []
            for kh in range(3):
                for kw in range(3):
                    off = (kh - 1) * W + (kw - 1)
                    if off == 0:
                        pieces.append(a)
                    else:
                        rolled = pltpu.roll(a, shift=(-off) % HW, axis=1)
                        pieces.append(rolled * tap_masks[kh * 3 + kw])
            rows = 9 * a.shape[0]
            if rows < k_target:
                pieces.append(jnp.zeros((k_target - rows, HW), f32))
            return jnp.concatenate(pieces, axis=0)

        def sig_logsig(s_pre):
            # one EUP exp shared by sigmoid and (stable) log-sigmoid
            e = jnp.exp(-jnp.abs(s_pre))
            inv = 1.0 / (1.0 + e)
            sig = jnp.where(s_pre >= 0.0, inv, e * inv)
            logsig = jnp.minimum(s_pre, 0.0) - jnp.log1p(e)
            return sig, logsig

        # ---- ActNorm + InvConv2dLU: tiny CxC channel mix as full-width FMAs ----
        wmv = wm_ref[...]
        z = jnp.zeros((C, HW), f32) + wmv[:, C:C + 1]
        for i in range(C):
            z = z + wmv[:, i:i + 1] * x2d[i:i + 1, :]

        # ---- injection conditioner net (fully VMEM resident) ----
        h = jnp.maximum(mm(w1i_, taps(xc2d, K1i)) + b1i_, 0.0)
        h = jnp.maximum(mm(w2i_, h) + b2i_, 0.0)
        g = mm(w3i_, taps(h, Kz)) + b3i                       # (2C, HW)
        s_pre = g[:C, :] + 2.0
        t = g[C:, :]
        sig, logsig = sig_logsig(s_pre)
        out_inj = (z + t) * sig
        ld = jnp.sum(logsig)

        # ---- coupling conditioner net ----
        in_a = out_inj[:Ch, :]
        in_b = out_inj[Ch:, :]
        hc = jnp.maximum(
            mm(w1c_, taps(jnp.concatenate([in_a, xc2d], axis=0), K1c)) + b1c_, 0.0)
        hc = jnp.maximum(mm(w2c_, hc) + b2c_, 0.0)
        gc = mm(w3c_, taps(hc, Kz)) + b3c                     # (C, HW)
        sc_pre = gc[:Ch, :] + 2.0
        tc = gc[Ch:, :]
        sigc, logsigc = sig_logsig(sc_pre)
        out_b = (in_b + tc) * sigc
        ld = ld + jnp.sum(logsigc)

        out_ref[0, :, :] = jnp.concatenate([in_a, out_b], axis=0)   # lane-dense store
        ld_ref[...] = jnp.broadcast_to(ld, ld_ref.shape)

    out3, ld = pl.pallas_call(
        kernel,
        out_shape=(jax.ShapeDtypeStruct((N, C, HW), f32),
                   jax.ShapeDtypeStruct((N, 1, 128), f32)),
        grid_spec=pltpu.PrefetchScalarGridSpec(
            num_scalar_prefetch=0,
            grid=(N,),
            in_specs=[
                pl.BlockSpec((1, C, HW), lambda b: (b, 0, 0)),
                pl.BlockSpec((1, Cc, HW), lambda b: (b, 0, 0)),
                pl.BlockSpec((C, C + 1), lambda b: (0, 0)),
                pl.BlockSpec((Cm, wa_cols), lambda b: (0, 0)),
                pl.BlockSpec((3 * C, Kz), lambda b: (0, 0)),
                pl.BlockSpec((9 + 3 * C, HW), lambda b: (0, 0)),
            ],
            out_specs=(
                pl.BlockSpec((1, C, HW), lambda b: (b, 0, 0)),
                pl.BlockSpec((1, 1, 128), lambda b: (b, 0, 0)),
            )),
        compiler_params=pltpu.CompilerParams(dimension_semantics=("parallel",)),
    )(x, xc, wm, wa, wz, pp)

    logdet_const = HW * (jnp.sum(jnp.log(jnp.abs(p['an_scale'])))
                         + jnp.sum(p['ic_ws']))
    total_logdet = logdet_const + ld[:, 0, 0]
    return out3.reshape(N, C, H, W), total_logdet


# ----------------------------------------------------------------------------
# Deterministic parameter init (shapes from the module's __init__)
# ----------------------------------------------------------------------------
def init_params(key, in_channels=4, cond_channels=2, mid_channels=32):
    C, Cc, Cm = in_channels, cond_channels, mid_channels
    ks = jax.random.split(key, 16)
    p = {}
    # ActNorm
    p['an_loc'] = 0.1 * jax.random.normal(ks[0], (C,), jnp.float32)
    p['an_scale'] = 0.5 + jax.random.uniform(ks[1], (C,), dtype=jnp.float32)
    # InvConv2dLU (PLU parametrization of a random orthogonal matrix)
    w0 = jax.random.normal(ks[2], (C, C), jnp.float32)
    q, _ = jnp.linalg.qr(w0)
    wp, wl, wu = jax.scipy.linalg.lu(q)
    s_diag = jnp.diag(wu)
    p['ic_wp'] = wp
    p['ic_wl'] = wl
    p['ic_ws'] = jnp.log(jnp.abs(s_diag))
    p['ic_sign'] = jnp.sign(s_diag)
    p['ic_wu'] = jnp.triu(wu, 1)
    # Injection net: Conv3x3(Cc->Cm), ReLU, Conv1x1(Cm->Cm), ReLU, ZeroConv3x3(Cm->2C)
    p['inj_w1'] = 0.05 * jax.random.normal(ks[3], (Cm, Cc, 3, 3), jnp.float32)
    p['inj_b1'] = jnp.zeros((Cm,), jnp.float32)
    p['inj_w2'] = 0.05 * jax.random.normal(ks[4], (Cm, Cm, 1, 1), jnp.float32)
    p['inj_b2'] = jnp.zeros((Cm,), jnp.float32)
    p['inj_w3'] = 0.02 * jax.random.normal(ks[5], (2 * C, Cm, 3, 3), jnp.float32)
    p['inj_b3'] = 0.01 * jax.random.normal(ks[6], (2 * C,), jnp.float32)
    p['inj_s3'] = 0.1 * jax.random.normal(ks[7], (2 * C,), jnp.float32)
    # Coupling net: Conv3x3(C//2+Cc->Cm), ReLU, Conv1x1(Cm->Cm), ReLU, ZeroConv3x3(Cm->C)
    p['cp_w1'] = 0.05 * jax.random.normal(ks[8], (Cm, C // 2 + Cc, 3, 3), jnp.float32)
    p['cp_b1'] = jnp.zeros((Cm,), jnp.float32)
    p['cp_w2'] = 0.05 * jax.random.normal(ks[9], (Cm, Cm, 1, 1), jnp.float32)
    p['cp_b2'] = jnp.zeros((Cm,), jnp.float32)
    p['cp_w3'] = 0.02 * jax.random.normal(ks[10], (C, Cm, 3, 3), jnp.float32)
    p['cp_b3'] = 0.01 * jax.random.normal(ks[11], (C,), jnp.float32)
    p['cp_s3'] = 0.1 * jax.random.normal(ks[12], (C,), jnp.float32)
    return p


# ----------------------------------------------------------------------------
# Pure-JAX reference (NCHW, lax.conv) for correctness check
# ----------------------------------------------------------------------------
def _ref_conv(x, w, b, padding):
    y = lax.conv_general_dilated(x, w, (1, 1), padding,
                                 dimension_numbers=('NCHW', 'OIHW', 'NCHW'))
    return y + b[None, :, None, None]


def ref_forward(p, x, xc):
    N, C, H, W = x.shape
    out = p['an_scale'][None, :, None, None] * (x + p['an_loc'][None, :, None, None])
    logdet = H * W * jnp.sum(jnp.log(jnp.abs(p['an_scale'])))

    wcc = _invconv_weight(p, C)[:, :, None, None]
    out = lax.conv_general_dilated(out, wcc, (1, 1), 'VALID',
                                   dimension_numbers=('NCHW', 'OIHW', 'NCHW'))
    det1 = H * W * jnp.sum(p['ic_ws'])

    def zero_conv(x_, w_, b_, s_):
        xp = jnp.pad(x_, ((0, 0), (0, 0), (1, 1), (1, 1)), constant_values=1.0)
        return _ref_conv(xp, w_, b_, 'VALID') * jnp.exp(3.0 * s_)[None, :, None, None]

    h = jax.nn.relu(_ref_conv(xc, p['inj_w1'], p['inj_b1'], 'SAME'))
    h = jax.nn.relu(_ref_conv(h, p['inj_w2'], p['inj_b2'], 'VALID'))
    h = zero_conv(h, p['inj_w3'], p['inj_b3'], p['inj_s3'])
    log_s, t = h[:, :C], h[:, C:]
    s = jax.nn.sigmoid(log_s + 2.0)
    out = (out + t) * s
    det2 = jnp.sum(jnp.log(s).reshape(N, -1), axis=1)

    Ch = C // 2
    in_a, in_b = out[:, :Ch], out[:, Ch:]
    g = jax.nn.relu(_ref_conv(jnp.concatenate([in_a, xc], axis=1),
                              p['cp_w1'], p['cp_b1'], 'SAME'))
    g = jax.nn.relu(_ref_conv(g, p['cp_w2'], p['cp_b2'], 'VALID'))
    g = zero_conv(g, p['cp_w3'], p['cp_b3'], p['cp_s3'])
    log_s, t = g[:, :Ch], g[:, Ch:]
    s = jax.nn.sigmoid(log_s + 2.0)
    out_b = (in_b + t) * s
    det3 = jnp.sum(jnp.log(s).reshape(N, -1), axis=1)
    out = jnp.concatenate([in_a, out_b], axis=1)
    return out, logdet + det1 + det2 + det3


# ----------------------------------------------------------------------------
if __name__ == "__main__":
    N, C, Cc, Cm, H, W = 2, 4, 2, 32, 16, 16
    k1, k2 = jax.random.split(jax.random.PRNGKey(0))
    x = jax.random.normal(k1, (N, C, H, W), jnp.float32)
    x_cond = jax.random.normal(k2, (N, Cc, H, W), jnp.float32)
    params = init_params(jax.random.PRNGKey(42), C, Cc, Cm)

    out, logdet = jax.jit(flow_forward)(params, x, x_cond)
    out = jax.block_until_ready(out)
    logdet = jax.block_until_ready(logdet)

    out_ref, logdet_ref = ref_forward(params, x, x_cond)
    assert out.shape == (N, C, H, W) and logdet.shape == (N,)
    assert jnp.allclose(out, out_ref, atol=1e-4, rtol=1e-4), "output mismatch"
    assert jnp.allclose(logdet, logdet_ref, atol=1e-3, rtol=1e-4), "logdet mismatch"
    print("KERNEL_OK")
</pallas_src>

<mosaic_0001>
module attributes {stable_mosaic.version = 11 : i64} {
  func.func @kernel(%arg0: i32, %arg1: memref<1x4x256xf32, #tpu.memory_space<vmem>>, %arg2: memref<1x2x256xf32, #tpu.memory_space<vmem>>, %arg3: memref<4x5xf32, #tpu.memory_space<vmem>>, %arg4: memref<32x132xf32, #tpu.memory_space<vmem>>, %arg5: memref<12x288xf32, #tpu.memory_space<vmem>>, %arg6: memref<21x256xf32, #tpu.memory_space<vmem>>, %arg7: memref<1x4x256xf32, #tpu.memory_space<vmem>>, %arg8: memref<1x1x128xf32, #tpu.memory_space<vmem>>) attributes {dimension_semantics = [#tpu.dimension_semantics<parallel>], iteration_bounds = array<i64: 2>, scalar_prefetch = 0 : i64, scratch_operands = 0 : i64, tpu.core_type = #tpu.core_type<tc>, window_params = [{transform_indices = @transform_0, window_bounds = array<i64: 1, 4, 256>}, {transform_indices = @transform_1, window_bounds = array<i64: 1, 2, 256>}, {pipeline_mode = #tpu.pipeline_mode<synchronous>, transform_indices = @transform_2, window_bounds = array<i64: 4, 5>}, {pipeline_mode = #tpu.pipeline_mode<synchronous>, transform_indices = @transform_3, window_bounds = array<i64: 32, 132>}, {pipeline_mode = #tpu.pipeline_mode<synchronous>, transform_indices = @transform_4, window_bounds = array<i64: 12, 288>}, {pipeline_mode = #tpu.pipeline_mode<synchronous>, transform_indices = @transform_5, window_bounds = array<i64: 21, 256>}, {transform_indices = @transform_6, window_bounds = array<i64: 1, 4, 256>}, {transform_indices = @transform_7, window_bounds = array<i64: 1, 1, 128>}]} {
    %c0 = arith.constant 0 : index
    %c0_0 = arith.constant 0 : index
    %c0_1 = arith.constant 0 : index
    %0 = vector.load %arg1[%c0, %c0_0, %c0_1] : memref<1x4x256xf32, #tpu.memory_space<vmem>>, vector<1x4x256xf32>
    %1 = vector.shape_cast %0 : vector<1x4x256xf32> to vector<4x256xf32>
    %c0_2 = arith.constant 0 : index
    %c0_3 = arith.constant 0 : index
    %c0_4 = arith.constant 0 : index
    %2 = vector.load %arg2[%c0_2, %c0_3, %c0_4] : memref<1x2x256xf32, #tpu.memory_space<vmem>>, vector<1x2x256xf32>
    %3 = vector.shape_cast %2 : vector<1x2x256xf32> to vector<2x256xf32>
    %c0_5 = arith.constant 0 : index
    %c0_6 = arith.constant 0 : index
    %4 = vector.load %arg6[%c0_5, %c0_6] : memref<21x256xf32, #tpu.memory_space<vmem>>, vector<21x256xf32>
    %5 = vector.extract_strided_slice %4 {offsets = [0, 0], sizes = [1, 256], strides = [1, 1]} : vector<21x256xf32> to vector<1x256xf32>
    %6 = vector.extract_strided_slice %4 {offsets = [1, 0], sizes = [1, 256], strides = [1, 1]} : vector<21x256xf32> to vector<1x256xf32>
    %7 = vector.extract_strided_slice %4 {offsets = [2, 0], sizes = [1, 256], strides = [1, 1]} : vector<21x256xf32> to vector<1x256xf32>
    %8 = vector.extract_strided_slice %4 {offsets = [3, 0], sizes = [1, 256], strides = [1, 1]} : vector<21x256xf32> to vector<1x256xf32>
    %9 = vector.extract_strided_slice %4 {offsets = [5, 0], sizes = [1, 256], strides = [1, 1]} : vector<21x256xf32> to vector<1x256xf32>
    %10 = vector.extract_strided_slice %4 {offsets = [6, 0], sizes = [1, 256], strides = [1, 1]} : vector<21x256xf32> to vector<1x256xf32>
    %11 = vector.extract_strided_slice %4 {offsets = [7, 0], sizes = [1, 256], strides = [1, 1]} : vector<21x256xf32> to vector<1x256xf32>
    %12 = vector.extract_strided_slice %4 {offsets = [8, 0], sizes = [1, 256], strides = [1, 1]} : vector<21x256xf32> to vector<1x256xf32>
    %13 = vector.extract_strided_slice %4 {offsets = [9, 0], sizes = [8, 256], strides = [1, 1]} : vector<21x256xf32> to vector<8x256xf32>
    %14 = vector.extract_strided_slice %4 {offsets = [17, 0], sizes = [4, 256], strides = [1, 1]} : vector<21x256xf32> to vector<4x256xf32>
    %c0_7 = arith.constant 0 : index
    %c0_8 = arith.constant 0 : index
    %15 = vector.load %arg4[%c0_7, %c0_8] : memref<32x132xf32, #tpu.memory_space<vmem>>, vector<32x132xf32>
    %16 = vector.extract_strided_slice %15 {offsets = [0, 0], sizes = [32, 24], strides = [1, 1]} : vector<32x132xf32> to vector<32x24xf32>
    %17 = vector.extract_strided_slice %15 {offsets = [0, 24], sizes = [32, 1], strides = [1, 1]} : vector<32x132xf32> to vector<32x1xf32>
    %18 = vector.extract_strided_slice %15 {offsets = [0, 25], sizes = [32, 32], strides = [1, 1]} : vector<32x132xf32> to vector<32x32xf32>
    %19 = vector.extract_strided_slice %15 {offsets = [0, 57], sizes = [32, 1], strides = [1, 1]} : vector<32x132xf32> to vector<32x1xf32>
    %20 = vector.extract_strided_slice %15 {offsets = [0, 58], sizes = [32, 40], strides = [1, 1]} : vector<32x132xf32> to vector<32x40xf32>
    %21 = vector.extract_strided_slice %15 {offsets = [0, 98], sizes = [32, 1], strides = [1, 1]} : vector<32x132xf32> to vector<32x1xf32>
    %22 = vector.extract_strided_slice %15 {offsets = [0, 99], sizes = [32, 32], strides = [1, 1]} : vector<32x132xf32> to vector<32x32xf32>
    %23 = vector.extract_strided_slice %15 {offsets = [0, 131], sizes = [32, 1], strides = [1, 1]} : vector<32x132xf32> to vector<32x1xf32>
    %c0_9 = arith.constant 0 : index
    %c0_10 = arith.constant 0 : index
    %24 = vector.load %arg5[%c0_9, %c0_10] : memref<12x288xf32, #tpu.memory_space<vmem>>, vector<12x288xf32>
    %25 = vector.extract_strided_slice %24 {offsets = [0, 0], sizes = [8, 288], strides = [1, 1]} : vector<12x288xf32> to vector<8x288xf32>
    %26 = vector.extract_strided_slice %24 {offsets = [8, 0], sizes = [4, 288], strides = [1, 1]} : vector<12x288xf32> to vector<4x288xf32>
    %c0_11 = arith.constant 0 : index
    %c0_12 = arith.constant 0 : index
    %27 = vector.load %arg3[%c0_11, %c0_12] : memref<4x5xf32, #tpu.memory_space<vmem>>, vector<4x5xf32>
    %cst = arith.constant 0.000000e+00 : f32
    %28 = vector.broadcast %cst : f32 to vector<4x256xf32>
    %29 = vector.extract_strided_slice %27 {offsets = [0, 4], sizes = [4, 1], strides = [1, 1]} : vector<4x5xf32> to vector<4x1xf32>
    %30 = vector.broadcast %29 : vector<4x1xf32> to vector<4x256xf32>
    %31 = arith.addf %28, %30 : vector<4x256xf32>
    %32 = vector.extract_strided_slice %27 {offsets = [0, 0], sizes = [4, 1], strides = [1, 1]} : vector<4x5xf32> to vector<4x1xf32>
    %33 = vector.extract_strided_slice %1 {offsets = [0, 0], sizes = [1, 256], strides = [1, 1]} : vector<4x256xf32> to vector<1x256xf32>
    %34 = vector.broadcast %32 : vector<4x1xf32> to vector<4x256xf32>
    %35 = vector.broadcast %33 : vector<1x256xf32> to vector<4x256xf32>
    %36 = arith.mulf %34, %35 : vector<4x256xf32>
    %37 = arith.addf %31, %36 : vector<4x256xf32>
    %38 = vector.extract_strided_slice %27 {offsets = [0, 1], sizes = [4, 1], strides = [1, 1]} : vector<4x5xf32> to vector<4x1xf32>
    %39 = vector.extract_strided_slice %1 {offsets = [1, 0], sizes = [1, 256], strides = [1, 1]} : vector<4x256xf32> to vector<1x256xf32>
    %40 = vector.broadcast %38 : vector<4x1xf32> to vector<4x256xf32>
    %41 = vector.broadcast %39 : vector<1x256xf32> to vector<4x256xf32>
    %42 = arith.mulf %40, %41 : vector<4x256xf32>
    %43 = arith.addf %37, %42 : vector<4x256xf32>
    %44 = vector.extract_strided_slice %27 {offsets = [0, 2], sizes = [4, 1], strides = [1, 1]} : vector<4x5xf32> to vector<4x1xf32>
    %45 = vector.extract_strided_slice %1 {offsets = [2, 0], sizes = [1, 256], strides = [1, 1]} : vector<4x256xf32> to vector<1x256xf32>
    %46 = vector.broadcast %44 : vector<4x1xf32> to vector<4x256xf32>
    %47 = vector.broadcast %45 : vector<1x256xf32> to vector<4x256xf32>
    %48 = arith.mulf %46, %47 : vector<4x256xf32>
    %49 = arith.addf %43, %48 : vector<4x256xf32>
    %50 = vector.extract_strided_slice %27 {offsets = [0, 3], sizes = [4, 1], strides = [1, 1]} : vector<4x5xf32> to vector<4x1xf32>
    %51 = vector.extract_strided_slice %1 {offsets = [3, 0], sizes = [1, 256], strides = [1, 1]} : vector<4x256xf32> to vector<1x256xf32>
    %52 = vector.broadcast %50 : vector<4x1xf32> to vector<4x256xf32>
    %53 = vector.broadcast %51 : vector<1x256xf32> to vector<4x256xf32>
    %54 = arith.mulf %52, %53 : vector<4x256xf32>
    %55 = arith.addf %49, %54 : vector<4x256xf32>
    %c17_i32 = arith.constant 17 : i32
    %56 = tpu.dynamic_rotate %3 by %c17_i32 dim 1 : vector<2x256xf32>, i32 -> vector<2x256xf32>
    %57 = vector.broadcast %5 : vector<1x256xf32> to vector<2x256xf32>
    %58 = arith.mulf %56, %57 : vector<2x256xf32>
    %c16_i32 = arith.constant 16 : i32
    %59 = tpu.dynamic_rotate %3 by %c16_i32 dim 1 : vector<2x256xf32>, i32 -> vector<2x256xf32>
    %60 = vector.broadcast %6 : vector<1x256xf32> to vector<2x256xf32>
    %61 = arith.mulf %59, %60 : vector<2x256xf32>
    %c15_i32 = arith.constant 15 : i32
    %62 = tpu.dynamic_rotate %3 by %c15_i32 dim 1 : vector<2x256xf32>, i32 -> vector<2x256xf32>
    %63 = vector.broadcast %7 : vector<1x256xf32> to vector<2x256xf32>
    %64 = arith.mulf %62, %63 : vector<2x256xf32>
    %c1_i32 = arith.constant 1 : i32
    %65 = tpu.dynamic_rotate %3 by %c1_i32 dim 1 : vector<2x256xf32>, i32 -> vector<2x256xf32>
    %66 = vector.broadcast %8 : vector<1x256xf32> to vector<2x256xf32>
    %67 = arith.mulf %65, %66 : vector<2x256xf32>
    %c255_i32 = arith.constant 255 : i32
    %68 = tpu.dynamic_rotate %3 by %c255_i32 dim 1 : vector<2x256xf32>, i32 -> vector<2x256xf32>
    %69 = vector.broadcast %9 : vector<1x256xf32> to vector<2x256xf32>
    %70 = arith.mulf %68, %69 : vector<2x256xf32>
    %c241_i32 = arith.constant 241 : i32
    %71 = tpu.dynamic_rotate %3 by %c241_i32 dim 1 : vector<2x256xf32>, i32 -> vector<2x256xf32>
    %72 = vector.broadcast %10 : vector<1x256xf32> to vector<2x256xf32>
    %73 = arith.mulf %71, %72 : vector<2x256xf32>
    %c240_i32 = arith.constant 240 : i32
    %74 = tpu.dynamic_rotate %3 by %c240_i32 dim 1 : vector<2x256xf32>, i32 -> vector<2x256xf32>
    %75 = vector.broadcast %11 : vector<1x256xf32> to vector<2x256xf32>
    %76 = arith.mulf %74, %75 : vector<2x256xf32>
    %c239_i32 = arith.constant 239 : i32
    %77 = tpu.dynamic_rotate %3 by %c239_i32 dim 1 : vector<2x256xf32>, i32 -> vector<2x256xf32>
    %78 = vector.broadcast %12 : vector<1x256xf32> to vector<2x256xf32>
    %79 = arith.mulf %77, %78 : vector<2x256xf32>
    %cst_13 = arith.constant 0.000000e+00 : f32
    %80 = vector.broadcast %cst_13 : f32 to vector<6x256xf32>
    %81 = tpu.concatenate %58, %61, %64, %67, %3, %70, %73, %76, %79, %80 in 0 : vector<2x256xf32>, vector<2x256xf32>, vector<2x256xf32>, vector<2x256xf32>, vector<2x256xf32>, vector<2x256xf32>, vector<2x256xf32>, vector<2x256xf32>, vector<2x256xf32>, vector<6x256xf32> -> vector<24x256xf32>
    %cst_14 = arith.constant dense<0.000000e+00> : vector<32x256xf32>
    %82 = tpu.matmul %16, %81, %cst_14 {dimension_numbers = #tpu.dot_dimension_numbers<[1], [0], [0], [1], [0, 0, 1, 1], [], []>} : vector<32x24xf32>, vector<24x256xf32>, vector<32x256xf32> -> vector<32x256xf32>
    %83 = vector.broadcast %17 : vector<32x1xf32> to vector<32x256xf32>
    %84 = arith.addf %82, %83 : vector<32x256xf32>
    %cst_15 = arith.constant 0.000000e+00 : f32
    %85 = vector.broadcast %cst_15 : f32 to vector<32x256xf32>
    %86 = arith.maximumf %84, %85 : vector<32x256xf32>
    %cst_16 = arith.constant dense<0.000000e+00> : vector<32x256xf32>
    %87 = tpu.matmul %18, %86, %cst_16 {dimension_numbers = #tpu.dot_dimension_numbers<[1], [0], [0], [1], [0, 0, 1, 1], [], []>} : vector<32x32xf32>, vector<32x256xf32>, vector<32x256xf32> -> vector<32x256xf32>
    %88 = vector.broadcast %19 : vector<32x1xf32> to vector<32x256xf32>
    %89 = arith.addf %87, %88 : vector<32x256xf32>
    %cst_17 = arith.constant 0.000000e+00 : f32
    %90 = vector.broadcast %cst_17 : f32 to vector<32x256xf32>
    %91 = arith.maximumf %89, %90 : vector<32x256xf32>
    %c17_i32_18 = arith.constant 17 : i32
    %92 = tpu.dynamic_rotate %91 by %c17_i32_18 dim 1 : vector<32x256xf32>, i32 -> vector<32x256xf32>
    %93 = vector.broadcast %5 : vector<1x256xf32> to vector<32x256xf32>
    %94 = arith.mulf %92, %93 : vector<32x256xf32>
    %c16_i32_19 = arith.constant 16 : i32
    %95 = tpu.dynamic_rotate %91 by %c16_i32_19 dim 1 : vector<32x256xf32>, i32 -> vector<32x256xf32>
    %96 = vector.broadcast %6 : vector<1x256xf32> to vector<32x256xf32>
    %97 = arith.mulf %95, %96 : vector<32x256xf32>
    %c15_i32_20 = arith.constant 15 : i32
    %98 = tpu.dynamic_rotate %91 by %c15_i32_20 dim 1 : vector<32x256xf32>, i32 -> vector<32x256xf32>
    %99 = vector.broadcast %7 : vector<1x256xf32> to vector<32x256xf32>
    %100 = arith.mulf %98, %99 : vector<32x256xf32>
    %c1_i32_21 = arith.constant 1 : i32
    %101 = tpu.dynamic_rotate %91 by %c1_i32_21 dim 1 : vector<32x256xf32>, i32 -> vector<32x256xf32>
    %102 = vector.broadcast %8 : vector<1x256xf32> to vector<32x256xf32>
    %103 = arith.mulf %101, %102 : vector<32x256xf32>
    %c255_i32_22 = arith.constant 255 : i32
    %104 = tpu.dynamic_rotate %91 by %c255_i32_22 dim 1 : vector<32x256xf32>, i32 -> vector<32x256xf32>
    %105 = vector.broadcast %9 : vector<1x256xf32> to vector<32x256xf32>
    %106 = arith.mulf %104, %105 : vector<32x256xf32>
    %c241_i32_23 = arith.constant 241 : i32
    %107 = tpu.dynamic_rotate %91 by %c241_i32_23 dim 1 : vector<32x256xf32>, i32 -> vector<32x256xf32>
    %108 = vector.broadcast %10 : vector<1x256xf32> to vector<32x256xf32>
    %109 = arith.mulf %107, %108 : vector<32x256xf32>
    %c240_i32_24 = arith.constant 240 : i32
    %110 = tpu.dynamic_rotate %91 by %c240_i32_24 dim 1 : vector<32x256xf32>, i32 -> vector<32x256xf32>
    %111 = vector.broadcast %11 : vector<1x256xf32> to vector<32x256xf32>
    %112 = arith.mulf %110, %111 : vector<32x256xf32>
    %c239_i32_25 = arith.constant 239 : i32
    %113 = tpu.dynamic_rotate %91 by %c239_i32_25 dim 1 : vector<32x256xf32>, i32 -> vector<32x256xf32>
    %114 = vector.broadcast %12 : vector<1x256xf32> to vector<32x256xf32>
    %115 = arith.mulf %113, %114 : vector<32x256xf32>
    %116 = tpu.concatenate %94, %97, %100, %103, %91, %106, %109, %112, %115 in 0 : vector<32x256xf32>, vector<32x256xf32>, vector<32x256xf32>, vector<32x256xf32>, vector<32x256xf32>, vector<32x256xf32>, vector<32x256xf32>, vector<32x256xf32>, vector<32x256xf32> -> vector<288x256xf32>
    %cst_26 = arith.constant dense<0.000000e+00> : vector<8x256xf32>
    %117 = tpu.matmul %25, %116, %cst_26 {dimension_numbers = #tpu.dot_dimension_numbers<[1], [0], [0], [1], [0, 0, 1, 1], [], []>} : vector<8x288xf32>, vector<288x256xf32>, vector<8x256xf32> -> vector<8x256xf32>
    %118 = arith.addf %117, %13 : vector<8x256xf32>
    %119 = vector.extract_strided_slice %118 {offsets = [0, 0], sizes = [4, 256], strides = [1, 1]} : vector<8x256xf32> to vector<4x256xf32>
    %cst_27 = arith.constant 2.000000e+00 : f32
    %120 = vector.broadcast %cst_27 : f32 to vector<4x256xf32>
    %121 = arith.addf %119, %120 : vector<4x256xf32>
    %122 = vector.extract_strided_slice %118 {offsets = [4, 0], sizes = [4, 256], strides = [1, 1]} : vector<8x256xf32> to vector<4x256xf32>
    %123 = math.absf %121 : vector<4x256xf32>
    %cst_28 = arith.constant 0.000000e+00 : f32
    %124 = vector.broadcast %cst_28 : f32 to vector<4x256xf32>
    %125 = arith.subf %124, %123 : vector<4x256xf32>
    %126 = math.exp %125 : vector<4x256xf32>
    %cst_29 = arith.constant 1.000000e+00 : f32
    %127 = vector.broadcast %cst_29 : f32 to vector<4x256xf32>
    %128 = arith.addf %127, %126 : vector<4x256xf32>
    %cst_30 = arith.constant 1.000000e+00 : f32
    %129 = vector.broadcast %cst_30 : f32 to vector<4x256xf32>
    %130 = arith.divf %129, %128 : vector<4x256xf32>
    %cst_31 = arith.constant 0.000000e+00 : f32
    %131 = vector.broadcast %cst_31 : f32 to vector<4x256xf32>
    %132 = arith.cmpf oge, %121, %131 : vector<4x256xf32>
    %133 = arith.mulf %126, %130 : vector<4x256xf32>
    %134 = arith.select %132, %130, %133 : vector<4x256xi1>, vector<4x256xf32>
    %cst_32 = arith.constant 0.000000e+00 : f32
    %135 = vector.broadcast %cst_32 : f32 to vector<4x256xf32>
    %136 = arith.minimumf %121, %135 : vector<4x256xf32>
    %137 = math.log1p %126 : vector<4x256xf32>
    %138 = arith.subf %136, %137 : vector<4x256xf32>
    %139 = arith.addf %55, %122 : vector<4x256xf32>
    %140 = arith.mulf %139, %134 : vector<4x256xf32>
    %141 = vector.shape_cast %138 : vector<4x256xf32> to vector<1x4x256xf32>
    %cst_33 = arith.constant dense<0.000000e+00> : vector<1xf32>
    %142 = vector.multi_reduction <add>, %141, %cst_33 [1, 2] : vector<1x4x256xf32> to vector<1xf32>
    %143 = vector.shape_cast %142 : vector<1xf32> to vector<1x1x1xf32>
    %144 = vector.extract %143[0, 0, 0] : f32 from vector<1x1x1xf32>
    %145 = vector.extract_strided_slice %140 {offsets = [0, 0], sizes = [2, 256], strides = [1, 1]} : vector<4x256xf32> to vector<2x256xf32>
    %146 = vector.extract_strided_slice %140 {offsets = [2, 0], sizes = [2, 256], strides = [1, 1]} : vector<4x256xf32> to vector<2x256xf32>
    %147 = tpu.concatenate %145, %3 in 0 : vector<2x256xf32>, vector<2x256xf32> -> vector<4x256xf32>
    %c17_i32_34 = arith.constant 17 : i32
    %148 = tpu.dynamic_rotate %147 by %c17_i32_34 dim 1 : vector<4x256xf32>, i32 -> vector<4x256xf32>
    %149 = vector.broadcast %5 : vector<1x256xf32> to vector<4x256xf32>
    %150 = arith.mulf %148, %149 : vector<4x256xf32>
    %c16_i32_35 = arith.constant 16 : i32
    %151 = tpu.dynamic_rotate %147 by %c16_i32_35 dim 1 : vector<4x256xf32>, i32 -> vector<4x256xf32>
    %152 = vector.broadcast %6 : vector<1x256xf32> to vector<4x256xf32>
    %153 = arith.mulf %151, %152 : vector<4x256xf32>
    %c15_i32_36 = arith.constant 15 : i32
    %154 = tpu.dynamic_rotate %147 by %c15_i32_36 dim 1 : vector<4x256xf32>, i32 -> vector<4x256xf32>
    %155 = vector.broadcast %7 : vector<1x256xf32> to vector<4x256xf32>
    %156 = arith.mulf %154, %155 : vector<4x256xf32>
    %c1_i32_37 = arith.constant 1 : i32
    %157 = tpu.dynamic_rotate %147 by %c1_i32_37 dim 1 : vector<4x256xf32>, i32 -> vector<4x256xf32>
    %158 = vector.broadcast %8 : vector<1x256xf32> to vector<4x256xf32>
    %159 = arith.mulf %157, %158 : vector<4x256xf32>
    %c255_i32_38 = arith.constant 255 : i32
    %160 = tpu.dynamic_rotate %147 by %c255_i32_38 dim 1 : vector<4x256xf32>, i32 -> vector<4x256xf32>
    %161 = vector.broadcast %9 : vector<1x256xf32> to vector<4x256xf32>
    %162 = arith.mulf %160, %161 : vector<4x256xf32>
    %c241_i32_39 = arith.constant 241 : i32
    %163 = tpu.dynamic_rotate %147 by %c241_i32_39 dim 1 : vector<4x256xf32>, i32 -> vector<4x256xf32>
    %164 = vector.broadcast %10 : vector<1x256xf32> to vector<4x256xf32>
    %165 = arith.mulf %163, %164 : vector<4x256xf32>
    %c240_i32_40 = arith.constant 240 : i32
    %166 = tpu.dynamic_rotate %147 by %c240_i32_40 dim 1 : vector<4x256xf32>, i32 -> vector<4x256xf32>
    %167 = vector.broadcast %11 : vector<1x256xf32> to vector<4x256xf32>
    %168 = arith.mulf %166, %167 : vector<4x256xf32>
    %c239_i32_41 = arith.constant 239 : i32
    %169 = tpu.dynamic_rotate %147 by %c239_i32_41 dim 1 : vector<4x256xf32>, i32 -> vector<4x256xf32>
    %170 = vector.broadcast %12 : vector<1x256xf32> to vector<4x256xf32>
    %171 = arith.mulf %169, %170 : vector<4x256xf32>
    %cst_42 = arith.constant 0.000000e+00 : f32
    %172 = vector.broadcast %cst_42 : f32 to vector<4x256xf32>
    %173 = tpu.concatenate %150, %153, %156, %159, %147, %162, %165, %168, %171, %172 in 0 : vector<4x256xf32>, vector<4x256xf32>, vector<4x256xf32>, vector<4x256xf32>, vector<4x256xf32>, vector<4x256xf32>, vector<4x256xf32>, vector<4x256xf32>, vector<4x256xf32>, vector<4x256xf32> -> vector<40x256xf32>
    %cst_43 = arith.constant dense<0.000000e+00> : vector<32x256xf32>
    %174 = tpu.matmul %20, %173, %cst_43 {dimension_numbers = #tpu.dot_dimension_numbers<[1], [0], [0], [1], [0, 0, 1, 1], [], []>} : vector<32x40xf32>, vector<40x256xf32>, vector<32x256xf32> -> vector<32x256xf32>
    %175 = vector.broadcast %21 : vector<32x1xf32> to vector<32x256xf32>
    %176 = arith.addf %174, %175 : vector<32x256xf32>
    %cst_44 = arith.constant 0.000000e+00 : f32
    %177 = vector.broadcast %cst_44 : f32 to vector<32x256xf32>
    %178 = arith.maximumf %176, %177 : vector<32x256xf32>
    %cst_45 = arith.constant dense<0.000000e+00> : vector<32x256xf32>
    %179 = tpu.matmul %22, %178, %cst_45 {dimension_numbers = #tpu.dot_dimension_numbers<[1], [0], [0], [1], [0, 0, 1, 1], [], []>} : vector<32x32xf32>, vector<32x256xf32>, vector<32x256xf32> -> vector<32x256xf32>
    %180 = vector.broadcast %23 : vector<32x1xf32> to vector<32x256xf32>
    %181 = arith.addf %179, %180 : vector<32x256xf32>
    %cst_46 = arith.constant 0.000000e+00 : f32
    %182 = vector.broadcast %cst_46 : f32 to vector<32x256xf32>
    %183 = arith.maximumf %181, %182 : vector<32x256xf32>
    %c17_i32_47 = arith.constant 17 : i32
    %184 = tpu.dynamic_rotate %183 by %c17_i32_47 dim 1 : vector<32x256xf32>, i32 -> vector<32x256xf32>
    %185 = vector.broadcast %5 : vector<1x256xf32> to vector<32x256xf32>
    %186 = arith.mulf %184, %185 : vector<32x256xf32>
    %c16_i32_48 = arith.constant 16 : i32
    %187 = tpu.dynamic_rotate %183 by %c16_i32_48 dim 1 : vector<32x256xf32>, i32 -> vector<32x256xf32>
    %188 = vector.broadcast %6 : vector<1x256xf32> to vector<32x256xf32>
    %189 = arith.mulf %187, %188 : vector<32x256xf32>
    %c15_i32_49 = arith.constant 15 : i32
    %190 = tpu.dynamic_rotate %183 by %c15_i32_49 dim 1 : vector<32x256xf32>, i32 -> vector<32x256xf32>
    %191 = vector.broadcast %7 : vector<1x256xf32> to vector<32x256xf32>
    %192 = arith.mulf %190, %191 : vector<32x256xf32>
    %c1_i32_50 = arith.constant 1 : i32
    %193 = tpu.dynamic_rotate %183 by %c1_i32_50 dim 1 : vector<32x256xf32>, i32 -> vector<32x256xf32>
    %194 = vector.broadcast %8 : vector<1x256xf32> to vector<32x256xf32>
    %195 = arith.mulf %193, %194 : vector<32x256xf32>
    %c255_i32_51 = arith.constant 255 : i32
    %196 = tpu.dynamic_rotate %183 by %c255_i32_51 dim 1 : vector<32x256xf32>, i32 -> vector<32x256xf32>
    %197 = vector.broadcast %9 : vector<1x256xf32> to vector<32x256xf32>
    %198 = arith.mulf %196, %197 : vector<32x256xf32>
    %c241_i32_52 = arith.constant 241 : i32
    %199 = tpu.dynamic_rotate %183 by %c241_i32_52 dim 1 : vector<32x256xf32>, i32 -> vector<32x256xf32>
    %200 = vector.broadcast %10 : vector<1x256xf32> to vector<32x256xf32>
    %201 = arith.mulf %199, %200 : vector<32x256xf32>
    %c240_i32_53 = arith.constant 240 : i32
    %202 = tpu.dynamic_rotate %183 by %c240_i32_53 dim 1 : vector<32x256xf32>, i32 -> vector<32x256xf32>
    %203 = vector.broadcast %11 : vector<1x256xf32> to vector<32x256xf32>
    %204 = arith.mulf %202, %203 : vector<32x256xf32>
    %c239_i32_54 = arith.constant 239 : i32
    %205 = tpu.dynamic_rotate %183 by %c239_i32_54 dim 1 : vector<32x256xf32>, i32 -> vector<32x256xf32>
    %206 = vector.broadcast %12 : vector<1x256xf32> to vector<32x256xf32>
    %207 = arith.mulf %205, %206 : vector<32x256xf32>
    %208 = tpu.concatenate %186, %189, %192, %195, %183, %198, %201, %204, %207 in 0 : vector<32x256xf32>, vector<32x256xf32>, vector<32x256xf32>, vector<32x256xf32>, vector<32x256xf32>, vector<32x256xf32>, vector<32x256xf32>, vector<32x256xf32>, vector<32x256xf32> -> vector<288x256xf32>
    %cst_55 = arith.constant dense<0.000000e+00> : vector<4x256xf32>
    %209 = tpu.matmul %26, %208, %cst_55 {dimension_numbers = #tpu.dot_dimension_numbers<[1], [0], [0], [1], [0, 0, 1, 1], [], []>} : vector<4x288xf32>, vector<288x256xf32>, vector<4x256xf32> -> vector<4x256xf32>
    %210 = arith.addf %209, %14 : vector<4x256xf32>
    %211 = vector.extract_strided_slice %210 {offsets = [0, 0], sizes = [2, 256], strides = [1, 1]} : vector<4x256xf32> to vector<2x256xf32>
    %cst_56 = arith.constant 2.000000e+00 : f32
    %212 = vector.broadcast %cst_56 : f32 to vector<2x256xf32>
    %213 = arith.addf %211, %212 : vector<2x256xf32>
    %214 = vector.extract_strided_slice %210 {offsets = [2, 0], sizes = [2, 256], strides = [1, 1]} : vector<4x256xf32> to vector<2x256xf32>
    %215 = math.absf %213 : vector<2x256xf32>
    %cst_57 = arith.constant 0.000000e+00 : f32
    %216 = vector.broadcast %cst_57 : f32 to vector<2x256xf32>
    %217 = arith.subf %216, %215 : vector<2x256xf32>
    %218 = math.exp %217 : vector<2x256xf32>
    %cst_58 = arith.constant 1.000000e+00 : f32
    %219 = vector.broadcast %cst_58 : f32 to vector<2x256xf32>
    %220 = arith.addf %219, %218 : vector<2x256xf32>
    %cst_59 = arith.constant 1.000000e+00 : f32
    %221 = vector.broadcast %cst_59 : f32 to vector<2x256xf32>
    %222 = arith.divf %221, %220 : vector<2x256xf32>
    %cst_60 = arith.constant 0.000000e+00 : f32
    %223 = vector.broadcast %cst_60 : f32 to vector<2x256xf32>
    %224 = arith.cmpf oge, %213, %223 : vector<2x256xf32>
    %225 = arith.mulf %218, %222 : vector<2x256xf32>
    %226 = arith.select %224, %222, %225 : vector<2x256xi1>, vector<2x256xf32>
    %cst_61 = arith.constant 0.000000e+00 : f32
    %227 = vector.broadcast %cst_61 : f32 to vector<2x256xf32>
    %228 = arith.minimumf %213, %227 : vector<2x256xf32>
    %229 = math.log1p %218 : vector<2x256xf32>
    %230 = arith.subf %228, %229 : vector<2x256xf32>
    %231 = arith.addf %146, %214 : vector<2x256xf32>
    %232 = arith.mulf %231, %226 : vector<2x256xf32>
    %233 = vector.shape_cast %230 : vector<2x256xf32> to vector<1x2x256xf32>
    %cst_62 = arith.constant dense<0.000000e+00> : vector<1xf32>
    %234 = vector.multi_reduction <add>, %233, %cst_62 [1, 2] : vector<1x2x256xf32> to vector<1xf32>
    %235 = vector.shape_cast %234 : vector<1xf32> to vector<1x1x1xf32>
    %236 = vector.extract %235[0, 0, 0] : f32 from vector<1x1x1xf32>
    %237 = arith.addf %144, %236 : f32
    %238 = tpu.concatenate %145, %232 in 0 : vector<2x256xf32>, vector<2x256xf32> -> vector<4x256xf32>
    %c0_63 = arith.constant 0 : index
    %c0_64 = arith.constant 0 : index
    %c0_65 = arith.constant 0 : index
    %239 = vector.load %arg7[%c0_63, %c0_64, %c0_65] : memref<1x4x256xf32, #tpu.memory_space<vmem>>, vector<1x4x256xf32>
    %240 = vector.shape_cast %239 : vector<1x4x256xf32> to vector<4x256xf32>
    %241 = vector.shape_cast %238 : vector<4x256xf32> to vector<1x4x256xf32>
    tpu.vector_store %arg7[%c0_63, %c0_64, %c0_65], %241 {strides = array<i32>} : memref<1x4x256xf32, #tpu.memory_space<vmem>>, vector<1x4x256xf32>,
    %242 = vector.broadcast %237 : f32 to vector<1x1x128xf32>
    %c0_66 = arith.constant 0 : index
    %c0_67 = arith.constant 0 : index
    %c0_68 = arith.constant 0 : index
    %243 = vector.load %arg8[%c0_66, %c0_67, %c0_68] : memref<1x1x128xf32, #tpu.memory_space<vmem>>, vector<1x1x128xf32>
    tpu.vector_store %arg8[%c0_66, %c0_67, %c0_68], %242 {strides = array<i32>} : memref<1x1x128xf32, #tpu.memory_space<vmem>>, vector<1x1x128xf32>,
    return
  }
  func.func @transform_0(%arg0: i32) -> (i32, i32, i32) {
    %c0_i32 = arith.constant 0 : i32
    %c0_i32_0 = arith.constant 0 : i32
    %c0_i32_1 = arith.constant 0 : i32
    return %arg0, %c0_i32, %c0_i32_0 : i32, i32, i32
  }
  func.func @transform_1(%arg0: i32) -> (i32, i32, i32) {
    %c0_i32 = arith.constant 0 : i32
    %c0_i32_0 = arith.constant 0 : i32
    %c0_i32_1 = arith.constant 0 : i32
    return %arg0, %c0_i32, %c0_i32_0 : i32, i32, i32
  }
  func.func @transform_2(%arg0: i32) -> (i32, i32) {
    %c0_i32 = arith.constant 0 : i32
    %c0_i32_0 = arith.constant 0 : i32
    %c0_i32_1 = arith.constant 0 : i32
    return %c0_i32, %c0_i32_0 : i32, i32
  }
  func.func @transform_3(%arg0: i32) -> (i32, i32) {
    %c0_i32 = arith.constant 0 : i32
    %c0_i32_0 = arith.constant 0 : i32
    %c0_i32_1 = arith.constant 0 : i32
    return %c0_i32, %c0_i32_0 : i32, i32
  }
  func.func @transform_4(%arg0: i32) -> (i32, i32) {
    %c0_i32 = arith.constant 0 : i32
    %c0_i32_0 = arith.constant 0 : i32
    %c0_i32_1 = arith.constant 0 : i32
    return %c0_i32, %c0_i32_0 : i32, i32
  }
  func.func @transform_5(%arg0: i32) -> (i32, i32) {
    %c0_i32 = arith.constant 0 : i32
    %c0_i32_0 = arith.constant 0 : i32
    %c0_i32_1 = arith.constant 0 : i32
    return %c0_i32, %c0_i32_0 : i32, i32
  }
  func.func @transform_6(%arg0: i32) -> (i32, i32, i32) {
    %c0_i32 = arith.constant 0 : i32
    %c0_i32_0 = arith.constant 0 : i32
    %c0_i32_1 = arith.constant 0 : i32
    return %arg0, %c0_i32, %c0_i32_0 : i32, i32, i32
  }
  func.func @transform_7(%arg0: i32) -> (i32, i32, i32) {
    %c0_i32 = arith.constant 0 : i32
    %c0_i32_0 = arith.constant 0 : i32
    %c0_i32_1 = arith.constant 0 : i32
    return %arg0, %c0_i32, %c0_i32_0 : i32, i32, i32
  }
}

</mosaic_0001>

<bundles_post_ra>
// kernel: flow_forward.1
= control target key start
LH: loop header
LB: loop body
LE: loop exit
PB: predicated region body
PF: predicated region fallthrough
CT: control target
= control target key end

     0   :  { %s2702_s24 = smov 0   ;;  %s4133_s0 = inlined_call_operand.vmem [shape: f32[2,4,256], index: 0, kind: input, shape index: {}]   ;;  %s4134_s1 = inlined_call_operand.vmem [shape: f32[2,2,256], index: 1, kind: input, shape index: {}]   ;;  %s4135_s2 = inlined_call_operand.vmem [shape: f32[4,5], index: 2, kind: input, shape index: {}]   ;;  %s4136_s3 = inlined_call_operand.vmem [shape: f32[32,132], index: 3, kind: input, shape index: {}]   ;;  %s4137_s4 = inlined_call_operand.vmem [shape: f32[12,288], index: 4, kind: input, shape index: {}]   ;;  %s4138_s5 = inlined_call_operand.vmem [shape: f32[21,256], index: 5, kind: input, shape index: {}]   ;;  %s4139_s6 = inlined_call_operand.vmem [shape: f32[2,4,256], index: 6, kind: output, shape index: {0}]   ;;  %s4140_s7 = inlined_call_operand.vmem [shape: f32[2,1,128], index: 7, kind: output, shape index: {1}]  }
   0x1 LB: > { %s2338_s25 = sadd.s32 4294967295, %s2639_s24   ;;  %p2342_p0 = scmp.ge.s32.totalorder %s2639_s24, 1  ;;  %s2639_s24 = sphi %s2702_s24, %s18_s24  }
   0x2   : > { %p250_p1 = scmp.lt.s32.totalorder %s2639_s24, 3 }
   0x4   : > { %p251_p2 = pnand %p2342_p0, %p250_p1 }
   0x6   : > { %254 = sbr.rel (%p251_p2) target bundleno = 2447 (0x98f), region = 44 }
   0xd   : > { %p290_p3 = scmp.lt.s32.totalorder %s2338_s25, 1  ;;  %v342_v0 = vlaneseq  ;;  %v2641_v1 = vmov 1983009808   ;;  %s2642_s30 = smov 127   ;;  %v4143_v8 = vmov 0.0   ;;  %v2767_v9 = vld [vmem:[%s4136_s3] sm:$0xff] }
   0xe   : > { %v444_v2 = vunpack.c.l.s4 %v2641_v1  ;;  %s2643_s8 = smov 16   ;;  %s2644_s9 = smov 15   ;;  %737 = vmatprep.mubr.f32.mxu0 %v4143_v8  ;;  %1588 = vmatprep.mubr.f32.mxu1 %v4143_v8  ;;  %v2772_v10 = vld [vmem:[%s4136_s3 + $0x10] sm:$0xff]  ;;  %v2651_v11 = vmov 24   ;;  %v2779_v12 = vld [vmem:[%s4136_s3 + $0x20] sm:$0xff]  ;;  %v311_v24 = vld [vmem:[%s4138_s5 + $0x8] sm:$0xff] }
   0xf   : > { %s4229_s25 = smov (!%p290_p3, %s2338_s25), 1  ;;  %v2712_v3 = vshrl.u32 %v342_v0, 7  ;;  %s2645_s10 = smov 113   ;;  %2589 = vset.pattern.permute.xlu0 %v2651_v11  ;;  %2590 = vset.pattern.permute.xlu1 %v2651_v11  ;;  %v2784_v13 = vld [vmem:[%s4136_s3 + $0x30] sm:$0xff]  ;;  %v2792_v18 = vand.u32 127, %v342_v0  ;;  %v310_v23 = vld [vmem:[%s4138_s5] sm:$0xff] }
  0x10   : > { %v445_v4 = vunpack.c.0.s8 %v444_v2  ;;  %s2374_s26 = sshll.u32 %s4229_s25, 2  ;;  %s2646_s11 = smov 17   ;;  %vm627_vm6 = vcmask 1041408   ;;  %vm630_vm8 = vcmask 1043456   ;;  %vm633_vm9 = vcmask 1045504  }
  0x11   : > { %4178 = vst [vmem:[#allocation2_spill] sm:$0xff] %v2712_v3  ;;  %s2718_s29 = scalar_lea.vmem %s4134_s1, %s2374_s26  ;;  %s2647_s12 = smov 1   ;;  %v2795_v19 = vsub.s32 5, %v2712_v3  ;;  %v2798_v20 = vsub.s32 2, %v2712_v3  ;;  %v2807_v25 = vsub.s32 1, %v2712_v3  ;;  %v2810_v26 = vsub.s32 6, %v2712_v3 }
  0x12   : > { %v2721_v5 = vsub.s32 %v445_v4, %v2712_v3  ;;  %v2724_v6 = vld.sshfl [vmem:[%s2718_s29] sm:$0x33 pattern:$0x76325410]  ;;  %s2648_s13 = smov 112   ;;  %s2650_s14 = smov 111  }
  0x13   : > { %523 = vrot.lane.b32.xlu1 %v2724_v6, %s2642_s30  ;;  %472 = vrot.lane.b32.xlu0 %v2724_v6, %s2643_s8  ;;  %v2732_v7 = vcombine.high %v2724_v6, %v2724_v6  ;;  %s2652_s23 = smov 103   ;;  %4180 = vst [vmem:[#allocation4_spill] sm:$0xff] %v2795_v19  ;;  %4181 = vst [vmem:[#allocation5_spill] sm:$0xff] %v2798_v20  ;;  %v2813_v27 = vsub.s32 0, %v2712_v3  ;;  %vm527_vm0 = vcmp.lt.s32.totalorder %v2792_v18, 127  ;;  %vm493_vm1 = vcmp.lt.s32.totalorder %v2792_v18, 15  ;;  %s307_s22 = scalar_lea.vmem %s4140_s7, %s4229_s25 }
  0x14   : > { %4179 = vst [vmem:[#allocation3_spill] sm:$0xff] %v2721_v5  ;;  %4182 = vst [vmem:[#allocation6_spill] sm:$0xff] %v2807_v25  ;;  %vm476_vm2 = vcmp.lt.s32.totalorder %v2792_v18, 16  ;;  %v2819_v28 = vsub.s32 3, %v2712_v3  ;;  %v2822_v29 = vrot.slane %v310_v23, %v2795_v19  ;;  %v2825_v30 = vrot.slane %v311_v24, %v2795_v19  ;;  %s2373_s20 = sshll.u32 %s4229_s25, 3  ;;  %s2659_s27 = smov 70  }
  0x15   : > { %4183 = vst [vmem:[#allocation7_spill] sm:$0xff] %v2810_v26  ;;  %4184 = vst [vmem:[#allocation8_spill] sm:$0xff] %v2813_v27  ;;  %v2828_v31 = vrot.slane %v310_v23, %v2798_v20  ;;  %v2831_v32 = vrot.slane %v311_v24, %v2798_v20  ;;  %v2834_v35 = vrot.slane %v310_v23, %v2807_v25  ;;  %vm544_vm3 = vcmp.lt.s32.totalorder %v2792_v18, 113  ;;  %s2661_s21 = smov 29   ;;  %s304_s17 = scalar_lea.vmem %s4139_s6, %s2373_s20 }
  0x16   : > { %4185 = vst [vmem:[#allocation9_spill] sm:$0xff] %v2819_v28  ;;  %v2837_v36 = vrot.slane %v311_v24, %v2807_v25  ;;  %v2841_v37 = vsub.s32 7, %v2712_v3  ;;  %v2844_v38 = vrot.slane %v310_v23, %v2810_v26  ;;  %v2847_v39 = vrot.slane %v311_v24, %v2810_v26 }
  0x17   : > { %489 = vrot.lane.b32.xlu0 %v2724_v6, %s2644_s9  ;;  %525 = vrot.lane.b32.xlu1 %v2732_v7, %s2642_s30  ;;  %vm459_vm4 = vcmp.lt.s32.totalorder %v2792_v18, 17  ;;  %v2851_v40 = vrot.slane %v310_v23, %v2813_v27  ;;  %v2856_v42 = vrot.slane %v311_v24, %v2813_v27  ;;  %vm510_vm5 = vcmp.lt.s32.totalorder %v2792_v18, 1 }
  0x18   : > { %4186 = vst [vmem:[#allocation10_spill] sm:$0xff] %v2841_v37  ;;  %v2860_v43 = vrot.slane %v310_v23, %v2819_v28  ;;  %v2869_v49 = vrot.slane %v311_v24, %v2819_v28  ;;  %vm561_vm7 = vcmp.lt.s32.totalorder %v2792_v18, 112  ;;  %v2877_v52 = vrot.slane %v310_v23, %v2841_v37 }
  0x19   : > { %v2885_v56 = vrot.slane %v311_v24, %v2841_v37  ;;  %vm578_vm10 = vcmp.lt.s32.totalorder %v2792_v18, 111  ;;  %vm664_vm11 = vcmask 195584   ;;  %vm794_vm12 = vcmask 261120   ;;  %v329_v18 = vld [vmem:[%s4137_s4 + $0x28] sm:$0xf] }
  0x1a   : > { %4187 = vst [vmem:[#allocation11_spill] sm:$0xff] %v2877_v52  ;;  %vm1160_vm13 = vcmask 1046528  }
  0x1b   : > { %491 = vrot.lane.b32.xlu1 %v2732_v7, %s2644_s9  ;;  %474 = vrot.lane.b32.xlu0 %v2732_v7, %s2643_s8  ;;  %4188 = vst [vmem:[#allocation12_spill] sm:$0xff] %v2885_v56 }
  0x1f   : > { %542 = vrot.lane.b32.xlu1 %v2732_v7, %s2645_s10  ;;  %540 = vrot.lane.b32.xlu0 %v2724_v6, %s2645_s10 }
  0x23   : > { %455 = vrot.lane.b32.xlu1 %v2732_v7, %s2646_s11  ;;  %453 = vrot.lane.b32.xlu0 %v2724_v6, %s2646_s11 }
  0x27   : > { %508 = vrot.lane.b32.xlu1 %v2732_v7, %s2647_s12  ;;  %506 = vrot.lane.b32.xlu0 %v2724_v6, %s2647_s12 }
  0x2b   : > { %559 = vrot.lane.b32.xlu1 %v2732_v7, %s2648_s13  ;;  %557 = vrot.lane.b32.xlu0 %v2724_v6, %s2648_s13 }
  0x2f   : > { %576 = vrot.lane.b32.xlu1 %v2732_v7, %s2650_s14  ;;  %574 = vrot.lane.b32.xlu0 %v2724_v6, %s2650_s14 }
  0x33   : > { %646 = vperm.xlu0 %2589, %v2767_v9   ;;  %651 = vperm.xlu1 %2590, %v2772_v10  }
  0x37   : > { %656 = vperm.xlu1 %2590, %v2779_v12   ;;  %661 = vperm.xlu0 %2589, %v2784_v13  }
  0x3b   : > { %786 = vrot.lane.b32.xlu1 %v2767_v9, %s2652_s23  ;;  %788 = vrot.lane.b32.xlu0 %v2772_v10, %s2652_s23 }
  0x3f   : > { %790 = vrot.lane.b32.xlu1 %v2779_v12, %s2652_s23  ;;  %792 = vrot.lane.b32.xlu0 %v2784_v13, %s2652_s23  ;;  %s294_s23 = scalar_lea.vmem %s4133_s0, %s2373_s20 }
  0x85   : > { %v524_v14 = vpop.permute.xlu1 %523  ;;  %v473_v15 = vpop.permute.xlu0 %472 }
  0x89   : > { %v490_v16 = vpop.permute.xlu0 %489  ;;  %v526_v17 = vpop.permute.xlu1 %525 }
  0x8a   : > { %v529_v41 = vsel %vm527_vm0, %v526_v17, %v524_v14  ;;  %v528_v44 = vsel %vm527_vm0, %v524_v14, %v526_v17 }
  0x8b   : > { %v539_v53 = vmul.f32 %v2825_v30, %v529_v41  ;;  %v538_v57 = vmul.f32 %v2822_v29, %v528_v44 }
  0x8d   : > { %v492_v21 = vpop.permute.xlu1 %491  ;;  %v475_v22 = vpop.permute.xlu0 %474 }
  0x8e   : > { %v477_v45 = vsel %vm476_vm2, %v473_v15, %v475_v22  ;;  %v478_v46 = vsel %vm476_vm2, %v475_v22, %v473_v15  ;;  %v494_v60 = vsel %vm493_vm1, %v490_v16, %v492_v21  ;;  %v495_v61 = vsel %vm493_vm1, %v492_v21, %v490_v16  ;;  %v2905_v15 = vld [vmem:[%s4138_s5 + $0x10] sm:$0xff] }
  0x8f   : > { %v487_v58 = vmul.f32 %v2834_v35, %v478_v46  ;;  %v488_v59 = vmul.f32 %v2837_v36, %v477_v45  ;;  %4189 = vst [vmem:[#allocation13_spill] sm:$0xff] %v2905_v15  ;;  %v612_v16 = vrot.slane %v539_v53, 6  ;;  %v504_v22 = vmul.f32 %v2828_v31, %v495_v61 }
  0x90   : > { %v505_v23 = vmul.f32 %v2831_v32, %v494_v60 }
  0x91   : > { %v543_v33 = vpop.permute.xlu1 %542  ;;  %v541_v34 = vpop.permute.xlu0 %540  ;;  %v593_v24 = vrot.slane %v487_v58, 6  ;;  %v599_v60 = vrot.slane %v504_v22, 4 }
  0x92   : > { %v545_v50 = vsel %vm544_vm3, %v541_v34, %v543_v33  ;;  %v546_v51 = vsel %vm544_vm3, %v543_v33, %v541_v34  ;;  %v594_v33 = vrot.slane %v488_v59, 6  ;;  %v611_v34 = vrot.slane %v538_v57, 6 }
  0x93   : > { %v555_v62 = vmul.f32 %v2844_v38, %v545_v50  ;;  %v556_v63 = vmul.f32 %v2847_v39, %v546_v51  ;;  %v600_v61 = vrot.slane %v505_v23, 4 }
  0x95   : > { %v456_v47 = vpop.permute.xlu1 %455  ;;  %v454_v48 = vpop.permute.xlu0 %453  ;;  %v617_v41 = vrot.slane %v555_v62, 4  ;;  %v618_v44 = vrot.slane %v556_v63, 4  ;;  %v637_v62 = vsel %vm627_vm6, %v2732_v7, %v612_v16 }
  0x96   : > { %v460_v54 = vsel %vm459_vm4, %v454_v48, %v456_v47  ;;  %v461_v55 = vsel %vm459_vm4, %v456_v47, %v454_v48  ;;  %v2915_v47 = vld [vmem:[%s4138_s5 + $0x18] sm:$0xff]  ;;  %v2919_v48 = vrot.slane %v2905_v15, %v2813_v27 }
  0x97   : > { %v470_v2 = vmul.f32 %v2851_v40, %v461_v55  ;;  %v471_v4 = vmul.f32 %v2856_v42, %v460_v54  ;;  %4190 = vst [vmem:[#allocation14_spill] sm:$0xff] %v2915_v47  ;;  %v2933_v63 = vrot.slane %v2915_v47, %v2813_v27 }
  0x98   : > { %4191 = vst [vmem:[#allocation15_spill] sm:$0xff] %v2919_v48 }
  0x99   : > { %v509_v0 = vpop.permute.xlu1 %508  ;;  %v507_v1 = vpop.permute.xlu0 %506  ;;  %v629_v53 = vsel %vm627_vm6, %v471_v4, %v594_v33  ;;  %v628_v54 = vsel %vm627_vm6, %v470_v2, %v593_v24  ;;  %4192 = vst [vmem:[#allocation16_spill] sm:$0xff] %v2933_v63  ;;  %v639_v2 = vsel %vm630_vm8, %v637_v62, %v618_v44 }
  0x9a   : > { %v511_v11 = vsel %vm510_vm5, %v507_v1, %v509_v0  ;;  %v512_v14 = vsel %vm510_vm5, %v509_v0, %v507_v1  ;;  %v631_v7 = vsel %vm630_vm8, %v628_v54, %v599_v60 }
  0x9b   : > { %v521_v17 = vmul.f32 %v2860_v43, %v512_v14  ;;  %v522_v21 = vmul.f32 %v2869_v49, %v511_v11  ;;  %v636_v14 = vsel %vm627_vm6, %v2724_v6, %v611_v34 }
  0x9c   : > { %v638_v16 = vsel %vm630_vm8, %v636_v14, %v617_v41  ;;  %v2653_v41 = vmov 57  }
  0x9d   : > { %v560_v45 = vpop.permute.xlu1 %559  ;;  %v558_v46 = vpop.permute.xlu0 %557  ;;  %v605_v55 = vrot.slane %v521_v17, 2  ;;  %v606_v57 = vrot.slane %v522_v21, 2  ;;  %v632_v17 = vsel %vm630_vm8, %v629_v53, %v600_v61  ;;  %2591 = vset.pattern.permute.xlu1 %v2653_v41  ;;  %2592 = vset.pattern.permute.xlu0 %v2653_v41 }
  0x9e   : > { %v562_v50 = vsel %vm561_vm7, %v558_v46, %v560_v45  ;;  %v563_v51 = vsel %vm561_vm7, %v560_v45, %v558_v46  ;;  %771 = vperm.xlu1 %2591, %v2767_v9   ;;  %775 = vperm.xlu0 %2592, %v2772_v10  }
  0x9f   : > { %v572_v58 = vmul.f32 %v2877_v52, %v562_v50  ;;  %v573_v59 = vmul.f32 %v2885_v56, %v563_v51  ;;  %v635_v22 = vsel %vm633_vm9, %v632_v17, %v606_v57  ;;  %v634_v24 = vsel %vm633_vm9, %v631_v7, %v605_v55 }
  0xa1   : > { %v623_v0 = vrot.slane %v572_v58, 2  ;;  %v624_v1 = vrot.slane %v573_v59, 2  ;;  %v577_v4 = vpop.permute.xlu1 %576  ;;  %v575_v11 = vpop.permute.xlu0 %574 }
  0xa2   : > { %v580_v21 = vsel %vm578_vm10, %v577_v4, %v575_v11  ;;  %v579_v6 = vsel %vm578_vm10, %v575_v11, %v577_v4  ;;  %779 = vperm.xlu1 %2591, %v2779_v12  }
  0xa3   : > { %v641_v23 = vsel %vm633_vm9, %v639_v2, %v624_v1  ;;  %v640_v33 = vsel %vm633_vm9, %v638_v16, %v623_v0  ;;  %v590_v34 = vmul.f32 %v2933_v63, %v580_v21  ;;  %v589_v46 = vmul.f32 %v2919_v48, %v579_v6 }
  0xa4   : > { %v2376_v44 = vpack.c.bf16 %v641_v23, %v635_v22  ;;  %v2378_v45 = vpack.c.bf16 %v640_v33, %v634_v24 }
  0xa6   : > { %2377 = vmatprep.subr.bf16.mxu0 %v2376_v44  ;;  %783 = vperm.xlu1 %2591, %v2784_v13  }
  0xa7   : > { %2379 = vmatpush1.bf16.msra.mxu0 %v2378_v45 }
  0xa8   : > { %2349 = vmatprep.subr.msk.mxu0 %vm627_vm6, %v590_v34 }
  0xab   : > { %2350 = vmatpush1.msk.msra.mxu0 %vm627_vm6, %v589_v46 }
  0xac   : > { %2351 = vmatmul.mubr.msk.f32.vlgmr.msra.gmra.mrb[0].mxu0 %vm664_vm11, %v2767_v9 }
  0xad   : > { %743 = vmatprep.mubr.f32.mxu0 %v4143_v8 }
  0xb0   : > { %2352 = vmatmul.mubr.msk.f32.gmra.mrb[2].mxu0 %vm664_vm11, %v2772_v10 }
  0xb1   : > { %749 = vmatprep.mubr.f32.mxu0 %v4143_v8 }
  0xb2   : > { %v647_v51 = vpop.permute.xlu0 %646  ;;  %v652_v54 = vpop.permute.xlu1 %651 }
  0xb4   : > { %2353 = vmatmul.mubr.msk.f32.gmra.mrb[4].mxu0 %vm664_vm11, %v2779_v12 }
  0xb5   : > { %755 = vmatprep.mubr.f32.mxu0 %v4143_v8 }
  0xb6   : > { %v657_v9 = vpop.permute.xlu1 %656  ;;  %v662_v14 = vpop.permute.xlu0 %661 }
  0xb8   : > { %2354 = vmatmul.mubr.msk.f32.gmra.mrb[6].mxu0 %vm664_vm11, %v2784_v13 }
  0xb9   : > { %867 = vmatprep.mubr.f32.mxu0 %v4143_v8 }
  0xba   : > { %v787_v45 = vpop.permute.xlu1 %786  ;;  %v789_v46 = vpop.permute.xlu0 %788 }
  0xbe   : > { %v791_v41 = vpop.permute.xlu1 %790 }
 0x17f   : > { %v739_v50 = vpop.f32.mrb[0].mxu0 }
 0x180   : > { %v741_v53 = vpop.f32.mrb[1].mxu0  ;;  %v740_v55 = vadd.f32 %v739_v50, %v647_v51  ;;  %v793_v50 = vpop.permute.xlu0 %792 }
 0x181   : > { %v742_v57 = vadd.f32 %v741_v53, %v647_v51  ;;  %v772_v51 = vpop.permute.xlu1 %771 }
 0x182   : > { %v762_v62 = vmax.f32 %v740_v55, 0.0 }
 0x183   : > { %v745_v58 = vpop.f32.mrb[2].mxu0  ;;  %v763_v1 = vmax.f32 %v742_v57, 0.0 }
 0x184   : > { %v746_v59 = vadd.f32 %v745_v58, %v652_v54  ;;  %v747_v60 = vpop.f32.mrb[3].mxu0  ;;  %v776_v57 = vpop.permute.xlu0 %775 }
 0x185   : > { %v748_v61 = vadd.f32 %v747_v60, %v652_v54 }
 0x186   : > { %v764_v0 = vmax.f32 %v746_v59, 0.0 }
 0x187   : > { %v765_v4 = vmax.f32 %v748_v61, 0.0  ;;  %v751_v10 = vpop.f32.mrb[4].mxu0 }
 0x188   : > { %v2382_v2 = vpack.c.bf16 %v764_v0, %v762_v62  ;;  %v753_v12 = vpop.f32.mrb[5].mxu0  ;;  %v752_v13 = vadd.f32 %v751_v10, %v657_v9 }
 0x189   : > { %v2380_v11 = vpack.c.bf16 %v765_v4, %v763_v1  ;;  %v754_v17 = vadd.f32 %v753_v12, %v657_v9 }
 0x18a   : > { %v766_v23 = vmax.f32 %v752_v13, 0.0  ;;  %v780_v13 = vpop.permute.xlu1 %779 }
 0x18b   : > { %v757_v21 = vpop.f32.mrb[6].mxu0  ;;  %2381 = vmatprep.subr.bf16.mxu0 %v2380_v11  ;;  %v767_v33 = vmax.f32 %v754_v17, 0.0 }
 0x18c   : > { %v758_v7 = vadd.f32 %v757_v21, %v662_v14  ;;  %v759_v16 = vpop.f32.mrb[7].mxu0  ;;  %2383 = vmatpush1.bf16.msra.mxu0 %v2382_v2 }
 0x18d   : > { %v760_v22 = vadd.f32 %v759_v16, %v662_v14 }
 0x18e   : > { %v768_v24 = vmax.f32 %v758_v7, 0.0  ;;  %v784_v17 = vpop.permute.xlu1 %783 }
 0x18f   : > { %v769_v44 = vmax.f32 %v760_v22, 0.0 }
 0x190   : > { %v2386_v6 = vpack.c.bf16 %v768_v24, %v766_v23 }
 0x191   : > { %v2384_v34 = vpack.c.bf16 %v769_v44, %v767_v33 }
 0x193   : > { %2385 = vmatprep.subr.bf16.mxu0 %v2384_v34 }
 0x194   : > { %2387 = vmatpush1.bf16.msra.mxu0 %v2386_v6  ;;  %v325_v6 = vld [vmem:[%s4137_s4 + $0x8] sm:$0xff] }
 0x197   : > { %2355 = vmatmul.mubr.msk.f32.vlgmr.msra.gmra.mrb[8].mxu0 %vm794_vm12, %v787_v45 }
 0x198   : > { %873 = vmatprep.mubr.f32.mxu0 %v4143_v8 }
 0x19b   : > { %2356 = vmatmul.mubr.msk.f32.gmra.mrb[10].mxu0 %vm794_vm12, %v789_v46 }
 0x19c   : > { %879 = vmatprep.mubr.f32.mxu0 %v4143_v8 }
 0x19f   : > { %2357 = vmatmul.mubr.msk.f32.gmra.mrb[12].mxu0 %vm794_vm12, %v791_v41 }
 0x1a0   : > { %885 = vmatprep.mubr.f32.mxu0 %v4143_v8 }
 0x1a3   : > { %2358 = vmatmul.mubr.msk.f32.gmra.mrb[14].mxu0 %vm794_vm12, %v793_v50  ;;  %v2654_v50 = vmov 4  }
 0x1a4   : > { %1236 = vmatprep.mubr.f32.mxu0 %v325_v6  ;;  %2594 = vset.pattern.permute.xlu1 %v2654_v50  ;;  %v4141_v6 = vmov 3  }
 0x26a   : > { %v869_v53 = vpop.f32.mrb[8].mxu0 }
 0x26b   : > { %v870_v54 = vadd.f32 %v869_v53, %v772_v51  ;;  %v871_v55 = vpop.f32.mrb[9].mxu0 }
 0x26c   : > { %v872_v10 = vadd.f32 %v871_v55, %v772_v51  ;;  %v2655_v51 = vmov 0   ;;  %v330_v55 = vld [vmem:[%s4135_s2] sm:$0xf] }
 0x26d   : > { %v2972_v58 = vmax.f32 %v870_v54, 0.0  ;;  %2593 = vset.pattern.permute.xlu0 %v2655_v51 }
 0x26e   : > { %v875_v59 = vpop.f32.mrb[10].mxu0  ;;  %v2994_v2 = vmax.f32 %v872_v10, 0.0 }
 0x26f   : > { %v876_v60 = vadd.f32 %v875_v59, %v776_v57  ;;  %900 = vrot.lane.b32.xlu0 %v2972_v58, %s2646_s11  ;;  %v877_v61 = vpop.f32.mrb[11].mxu0 }
 0x270   : > { %v878_v12 = vadd.f32 %v877_v61, %v776_v57 }
 0x271   : > { %v2976_v62 = vmax.f32 %v876_v60, 0.0  ;;  %v2656_v60 = vmov 2  }
 0x272   : > { %v881_v0 = vpop.f32.mrb[12].mxu0  ;;  %v3000_v11 = vmax.f32 %v878_v12, 0.0 }
 0x273   : > { %932 = vrot.lane.b32.xlu0 %v2972_v58, %s2643_s8  ;;  %v883_v1 = vpop.f32.mrb[13].mxu0  ;;  %902 = vrot.lane.b32.xlu1 %v2976_v62, %s2646_s11  ;;  %v882_v14 = vadd.f32 %v881_v0, %v780_v13 }
 0x274   : > { %v884_v22 = vadd.f32 %v883_v1, %v780_v13  ;;  %v2657_v1 = vmov 1  }
 0x275   : > { %v3018_v21 = vmax.f32 %v882_v14, 0.0 }
 0x276   : > { %v887_v9 = vpop.f32.mrb[14].mxu0  ;;  %v3042_v23 = vmax.f32 %v884_v22, 0.0 }
 0x277   : > { %964 = vrot.lane.b32.xlu0 %v2972_v58, %s2644_s9  ;;  %v889_v4 = vpop.f32.mrb[15].mxu0  ;;  %934 = vrot.lane.b32.xlu1 %v2976_v62, %s2643_s8  ;;  %v888_v7 = vadd.f32 %v887_v9, %v784_v17 }
 0x278   : > { %v890_v24 = vadd.f32 %v889_v4, %v784_v17 }
 0x279   : > { %v3024_v16 = vmax.f32 %v888_v7, 0.0 }
 0x27a   : > { %v3048_v33 = vmax.f32 %v890_v24, 0.0 }
 0x27b   : > { %996 = vrot.lane.b32.xlu0 %v2972_v58, %s2647_s12  ;;  %966 = vrot.lane.b32.xlu1 %v2976_v62, %s2644_s9 }
 0x27f   : > { %1028 = vrot.lane.b32.xlu0 %v2972_v58, %s2642_s30  ;;  %998 = vrot.lane.b32.xlu1 %v2976_v62, %s2647_s12 }
 0x283   : > { %908 = vrot.lane.b32.xlu0 %v2994_v2, %s2646_s11  ;;  %1030 = vrot.lane.b32.xlu1 %v2976_v62, %s2642_s30 }
 0x287   : > { %940 = vrot.lane.b32.xlu0 %v2994_v2, %s2643_s8  ;;  %910 = vrot.lane.b32.xlu1 %v3000_v11, %s2646_s11 }
 0x28b   : > { %972 = vrot.lane.b32.xlu0 %v2994_v2, %s2644_s9  ;;  %942 = vrot.lane.b32.xlu1 %v3000_v11, %s2643_s8 }
 0x28f   : > { %1004 = vrot.lane.b32.xlu0 %v2994_v2, %s2647_s12  ;;  %974 = vrot.lane.b32.xlu1 %v3000_v11, %s2644_s9 }
 0x293   : > { %1036 = vrot.lane.b32.xlu0 %v2994_v2, %s2642_s30  ;;  %1006 = vrot.lane.b32.xlu1 %v3000_v11, %s2647_s12 }
 0x297   : > { %904 = vrot.lane.b32.xlu0 %v3018_v21, %s2646_s11  ;;  %1038 = vrot.lane.b32.xlu1 %v3000_v11, %s2642_s30 }
 0x29b   : > { %936 = vrot.lane.b32.xlu0 %v3018_v21, %s2643_s8  ;;  %906 = vrot.lane.b32.xlu1 %v3024_v16, %s2646_s11 }
 0x29f   : > { %968 = vrot.lane.b32.xlu0 %v3018_v21, %s2644_s9  ;;  %938 = vrot.lane.b32.xlu1 %v3024_v16, %s2643_s8 }
 0x2a3   : > { %1000 = vrot.lane.b32.xlu0 %v3018_v21, %s2647_s12  ;;  %970 = vrot.lane.b32.xlu1 %v3024_v16, %s2644_s9 }
 0x2a7   : > { %1032 = vrot.lane.b32.xlu0 %v3018_v21, %s2642_s30  ;;  %1002 = vrot.lane.b32.xlu1 %v3024_v16, %s2647_s12 }
 0x2ab   : > { %912 = vrot.lane.b32.xlu0 %v3042_v23, %s2646_s11  ;;  %1034 = vrot.lane.b32.xlu1 %v3024_v16, %s2642_s30 }
 0x2af   : > { %1060 = vrot.lane.b32.xlu0 %v2972_v58, %s2645_s10  ;;  %914 = vrot.lane.b32.xlu1 %v3048_v33, %s2646_s11 }
 0x2b3   : > { %944 = vrot.lane.b32.xlu0 %v3042_v23, %s2643_s8  ;;  %1062 = vrot.lane.b32.xlu1 %v2976_v62, %s2645_s10 }
 0x2b7   : > { %976 = vrot.lane.b32.xlu0 %v3042_v23, %s2644_s9  ;;  %946 = vrot.lane.b32.xlu1 %v3048_v33, %s2643_s8 }
 0x2bb   : > { %1008 = vrot.lane.b32.xlu0 %v3042_v23, %s2647_s12  ;;  %1070 = vrot.lane.b32.xlu1 %v3000_v11, %s2645_s10 }
 0x2bf   : > { %1040 = vrot.lane.b32.xlu0 %v3042_v23, %s2642_s30  ;;  %978 = vrot.lane.b32.xlu1 %v3048_v33, %s2644_s9 }
 0x2c3   : > { %1068 = vrot.lane.b32.xlu0 %v2994_v2, %s2645_s10  ;;  %1066 = vrot.lane.b32.xlu1 %v3024_v16, %s2645_s10 }
 0x2c7   : > { %1064 = vrot.lane.b32.xlu0 %v3018_v21, %s2645_s10  ;;  %1010 = vrot.lane.b32.xlu1 %v3048_v33, %s2647_s12 }
 0x2cb   : > { %1072 = vrot.lane.b32.xlu0 %v3042_v23, %s2645_s10  ;;  %1094 = vrot.lane.b32.xlu1 %v2976_v62, %s2648_s13 }
 0x2cf   : > { %1092 = vrot.lane.b32.xlu0 %v2972_v58, %s2648_s13  ;;  %1102 = vrot.lane.b32.xlu1 %v3000_v11, %s2648_s13 }
 0x2d3   : > { %1100 = vrot.lane.b32.xlu0 %v2994_v2, %s2648_s13  ;;  %1098 = vrot.lane.b32.xlu1 %v3024_v16, %s2648_s13 }
 0x2d7   : > { %1096 = vrot.lane.b32.xlu0 %v3018_v21, %s2648_s13  ;;  %1042 = vrot.lane.b32.xlu1 %v3048_v33, %s2642_s30 }
 0x2db   : > { %1104 = vrot.lane.b32.xlu0 %v3042_v23, %s2648_s13  ;;  %1126 = vrot.lane.b32.xlu1 %v2976_v62, %s2650_s14 }
 0x2df   : > { %1124 = vrot.lane.b32.xlu0 %v2972_v58, %s2650_s14  ;;  %1074 = vrot.lane.b32.xlu1 %v3048_v33, %s2645_s10 }
 0x2e1   : > { %v901_v44 = vpop.permute.xlu0 %900 }
 0x2e3   : > { %1132 = vrot.lane.b32.xlu0 %v2994_v2, %s2650_s14  ;;  %1134 = vrot.lane.b32.xlu1 %v3000_v11, %s2650_s14 }
 0x2e5   : > { %v903_v34 = vpop.permute.xlu1 %902  ;;  %v3109_v45 = vpop.permute.xlu0 %932 }
 0x2e7   : > { %1128 = vrot.lane.b32.xlu0 %v3018_v21, %s2650_s14  ;;  %1106 = vrot.lane.b32.xlu1 %v3048_v33, %s2648_s13 }
 0x2e9   : > { %v3115_v46 = vpop.permute.xlu1 %934  ;;  %v3117_v41 = vpop.permute.xlu0 %964 }
 0x2eb   : > { %1136 = vrot.lane.b32.xlu0 %v3042_v23, %s2650_s14  ;;  %1130 = vrot.lane.b32.xlu1 %v3024_v16, %s2650_s14 }
 0x2ed   : > { %v3123_v53 = vpop.permute.xlu1 %966  ;;  %v3125_v54 = vpop.permute.xlu0 %996 }
 0x2ef   : > { %1138 = vrot.lane.b32.xlu1 %v3048_v33, %s2650_s14  ;;  %338 = vperm.xlu0 %2593, %v330_v55  }
 0x2f1   : > { %v3132_v57 = vpop.permute.xlu1 %998  ;;  %v3134_v59 = vpop.permute.xlu0 %1028 }
 0x2f3   : > { %333 = vperm.xlu1 %2594, %v330_v55   ;;  %2596 = vset.pattern.permute.xlu0 %v2656_v60 }
 0x2f4   : > { %391 = vperm.xlu0 %2596, %v330_v55  }
 0x2f5   : > { %v3136_v61 = vpop.permute.xlu1 %1030  ;;  %v909_v0 = vpop.permute.xlu0 %908 }
 0x2f6   : > { %v916_v9 = vsel %vm459_vm4, %v901_v44, %v909_v0  ;;  %v920_v4 = vsel %vm459_vm4, %v909_v0, %v901_v44 }
 0x2f7   : > { %2595 = vset.pattern.permute.xlu1 %v2657_v1  ;;  %v924_v17 = vmul.f32 %v920_v4, %v2851_v40  ;;  %v925_v7 = vmul.f32 %v916_v9, %v2856_v42 }
 0x2f8   : > { %365 = vperm.xlu1 %2595, %v330_v55  }
 0x2f9   : > { %v911_v10 = vpop.permute.xlu1 %910  ;;  %v941_v12 = vpop.permute.xlu0 %940 }
 0x2fa   : > { %v917_v13 = vsel %vm459_vm4, %v903_v34, %v911_v10  ;;  %v921_v14 = vsel %vm459_vm4, %v911_v10, %v903_v34  ;;  %v948_v28 = vsel %vm476_vm2, %v3109_v45, %v941_v12 }
 0x2fb   : > { %v926_v22 = vmul.f32 %v921_v14, %v2851_v40  ;;  %v927_v24 = vmul.f32 %v917_v13, %v2856_v42 }
 0x2fc   : > { %2597 = vset.pattern.permute.xlu1 %v4141_v6 }
 0x2fd   : > { %v2390_v44 = vpack.c.bf16 %v926_v22, %v924_v17  ;;  %v943_v50 = vpop.permute.xlu1 %942  ;;  %v3151_v51 = vpop.permute.xlu0 %972  ;;  %v2388_v60 = vpack.c.bf16 %v927_v24, %v925_v7  ;;  %417 = vperm.xlu1 %2597, %v330_v55  }
 0x2fe   : > { %v949_v8 = vsel %vm476_vm2, %v3115_v46, %v943_v50  ;;  %v953_v19 = vsel %vm476_vm2, %v943_v50, %v3115_v46  ;;  %v952_v46 = vsel %vm476_vm2, %v941_v12, %v3109_v45 }
 0x2ff   : > { %2389 = vmatprep.subr.bf16.mxu0 %v2388_v60  ;;  %v959_v25 = vmul.f32 %v949_v8, %v2837_v36  ;;  %v957_v8 = vmul.f32 %v948_v28, %v2837_v36  ;;  %v958_v50 = vmul.f32 %v953_v19, %v2834_v35 }
 0x300   : > { %2391 = vmatpush1.bf16.msra.mxu0 %v2390_v44 }
 0x301   : > { %v975_v34 = vpop.permute.xlu1 %974  ;;  %v3153_v0 = vpop.permute.xlu0 %1004 }
 0x305   : > { %v3155_v1 = vpop.permute.xlu1 %1006  ;;  %v3157_v9 = vpop.permute.xlu0 %1036 }
 0x309   : > { %v3159_v4 = vpop.permute.xlu1 %1038  ;;  %v905_v10 = vpop.permute.xlu0 %904 }
 0x30d   : > { %v907_v13 = vpop.permute.xlu1 %906  ;;  %v937_v14 = vpop.permute.xlu0 %936 }
 0x311   : > { %v939_v17 = vpop.permute.xlu1 %938  ;;  %v969_v22 = vpop.permute.xlu0 %968 }
 0x315   : > { %v3161_v6 = vpop.permute.xlu1 %970  ;;  %v3163_v7 = vpop.permute.xlu0 %1000 }
 0x319   : > { %v3165_v55 = vpop.permute.xlu1 %1002  ;;  %v3167_v24 = vpop.permute.xlu0 %1032 }
 0x31d   : > { %v3169_v44 = vpop.permute.xlu1 %1034  ;;  %v913_v60 = vpop.permute.xlu0 %912 }
 0x31e   : > { %v918_v5 = vsel %vm459_vm4, %v905_v10, %v913_v60  ;;  %v922_v37 = vsel %vm459_vm4, %v913_v60, %v905_v10 }
 0x31f   : > { %v928_v10 = vmul.f32 %v922_v37, %v2851_v40  ;;  %v929_v60 = vmul.f32 %v918_v5, %v2856_v42  ;;  %v956_v37 = vmul.f32 %v952_v46, %v2834_v35  ;;  %v2396_v5 = vpack.c.bf16 %v959_v25, %v957_v8 }
 0x320   : > { %v985_v25 = vsel %vm493_vm1, %v975_v34, %v3123_v53 }
 0x321   : > { %v915_v26 = vpop.permute.xlu1 %914  ;;  %v3181_v20 = vpop.permute.xlu0 %1060  ;;  %v2398_v19 = vpack.c.bf16 %v958_v50, %v956_v37  ;;  %v990_v50 = vmul.f32 %v985_v25, %v2828_v31  ;;  %v1017_v25 = vsel %vm510_vm5, %v3155_v1, %v3132_v57 }
 0x322   : > { %v919_v27 = vsel %vm459_vm4, %v907_v13, %v915_v26  ;;  %v923_v3 = vsel %vm459_vm4, %v915_v26, %v907_v13 }
 0x323   : > { %v930_v47 = vmul.f32 %v923_v3, %v2851_v40  ;;  %v931_v15 = vmul.f32 %v919_v27, %v2856_v42  ;;  %v981_v3 = vsel %vm493_vm1, %v3123_v53, %v975_v34  ;;  %v984_v53 = vsel %vm493_vm1, %v3151_v51, %v3117_v41 }
 0x324   : > { %v991_v12 = vmul.f32 %v981_v3, %v2831_v32  ;;  %v988_v3 = vmul.f32 %v984_v53, %v2828_v31 }
 0x325   : > { %v2394_v48 = vpack.c.bf16 %v930_v47, %v928_v10  ;;  %v3200_v63 = vpop.permute.xlu1 %1062  ;;  %v945_v26 = vpop.permute.xlu0 %944  ;;  %v2392_v13 = vpack.c.bf16 %v931_v15, %v929_v60  ;;  %v980_v15 = vsel %vm493_vm1, %v3117_v41, %v3151_v51 }
 0x326   : > { %v950_v27 = vsel %vm476_vm2, %v937_v14, %v945_v26  ;;  %v954_v28 = vsel %vm476_vm2, %v945_v26, %v937_v14  ;;  %v989_v34 = vmul.f32 %v980_v15, %v2831_v32 }
 0x327   : > { %2393 = vmatprep.subr.bf16.mxu0 %v2392_v13  ;;  %v960_v14 = vmul.f32 %v954_v28, %v2834_v35  ;;  %v961_v60 = vmul.f32 %v950_v27, %v2837_v36  ;;  %v2406_v28 = vpack.c.bf16 %v990_v50, %v988_v3 }
 0x328   : > { %2395 = vmatpush1.bf16.msra.mxu0 %v2394_v48  ;;  %v2404_v27 = vpack.c.bf16 %v991_v12, %v989_v34  ;;  %v1022_v34 = vmul.f32 %v1017_v25, %v2860_v43 }
 0x329   : > { %v947_v47 = vpop.permute.xlu1 %946  ;;  %2397 = vmatprep.subr.bf16.mxu0 %v2396_v5  ;;  %v977_v45 = vpop.permute.xlu0 %976  ;;  %v1013_v5 = vsel %vm510_vm5, %v3132_v57, %v3155_v1  ;;  %v1016_v57 = vsel %vm510_vm5, %v3153_v0, %v3125_v54 }
 0x32a   : > { %v951_v10 = vsel %vm476_vm2, %v939_v17, %v947_v47  ;;  %v955_v48 = vsel %vm476_vm2, %v947_v47, %v939_v17  ;;  %v982_v41 = vsel %vm493_vm1, %v969_v22, %v977_v45  ;;  %v986_v51 = vsel %vm493_vm1, %v977_v45, %v969_v22 }
 0x32b   : > { %v962_v46 = vmul.f32 %v955_v48, %v2834_v35  ;;  %v963_v8 = vmul.f32 %v951_v10, %v2837_v36  ;;  %v1023_v12 = vmul.f32 %v1013_v5, %v2869_v49  ;;  %v992_v10 = vmul.f32 %v986_v51, %v2828_v31 }
 0x32c   : > { %2399 = vmatpush1.bf16.msra.mxu0 %v2398_v19  ;;  %v1012_v19 = vsel %vm510_vm5, %v3125_v54, %v3153_v0  ;;  %v993_v48 = vmul.f32 %v982_v41, %v2831_v32 }
 0x32d   : > { %v2402_v26 = vpack.c.bf16 %v962_v46, %v960_v14  ;;  %v3232_v17 = vpop.permute.xlu1 %1070  ;;  %v1009_v13 = vpop.permute.xlu0 %1008  ;;  %v2400_v37 = vpack.c.bf16 %v963_v8, %v961_v60  ;;  %v1021_v1 = vmul.f32 %v1012_v19, %v2869_v49 }
 0x32e   : > { %v1018_v54 = vsel %vm510_vm5, %v1009_v13, %v3163_v7 }
 0x32f   : > { %2401 = vmatprep.subr.bf16.mxu0 %v2400_v37  ;;  %v2412_v50 = vpack.c.bf16 %v1023_v12, %v1021_v1  ;;  %v1014_v37 = vsel %vm510_vm5, %v3163_v7, %v1009_v13  ;;  %v1024_v51 = vmul.f32 %v1018_v54, %v2860_v43 }
 0x330   : > { %2403 = vmatpush1.bf16.msra.mxu0 %v2402_v26  ;;  %v1020_v26 = vmul.f32 %v1016_v57, %v2860_v43  ;;  %v1044_v57 = vsel %vm527_vm0, %v3134_v59, %v3157_v9 }
 0x331   : > { %v979_v15 = vpop.permute.xlu1 %978  ;;  %2405 = vmatprep.subr.bf16.mxu0 %v2404_v27  ;;  %v1041_v47 = vpop.permute.xlu0 %1040 }
 0x332   : > { %v983_v22 = vsel %vm493_vm1, %v3161_v6, %v979_v15  ;;  %v987_v45 = vsel %vm493_vm1, %v979_v15, %v3161_v6  ;;  %v2414_v5 = vpack.c.bf16 %v1022_v34, %v1020_v26 }
 0x333   : > { %v994_v14 = vmul.f32 %v987_v45, %v2828_v31  ;;  %v995_v60 = vmul.f32 %v983_v22, %v2831_v32  ;;  %v2420_v22 = vpack.c.bf16 %v3000_v11, %v2994_v2  ;;  %v1045_v2 = vsel %vm527_vm0, %v3136_v61, %v3159_v4 }
 0x334   : > { %2407 = vmatpush1.bf16.msra.mxu0 %v2406_v28  ;;  %v1025_v28 = vmul.f32 %v1014_v37, %v2869_v49  ;;  %v2422_v11 = vpack.c.bf16 %v2976_v62, %v2972_v58  ;;  %v2426_v58 = vpack.c.bf16 %v3024_v16, %v3018_v21  ;;  %v1052_v62 = vmul.f32 %v1044_v57, %v2822_v29 }
 0x335   : > { %v2410_v46 = vpack.c.bf16 %v994_v14, %v992_v10  ;;  %v3267_v8 = vpop.permute.xlu1 %1066  ;;  %v1069_v6 = vpop.permute.xlu0 %1068  ;;  %v2408_v53 = vpack.c.bf16 %v995_v60, %v993_v48  ;;  %v1048_v48 = vsel %vm527_vm0, %v3157_v9, %v3134_v59  ;;  %v2424_v60 = vpack.c.bf16 %v3048_v33, %v3042_v23 }
 0x336   : > { %v1053_v1 = vmul.f32 %v1048_v48, %v2825_v30  ;;  %v1046_v23 = vsel %vm527_vm0, %v3167_v24, %v1041_v47  ;;  %v1050_v59 = vsel %vm527_vm0, %v1041_v47, %v3167_v24  ;;  %v1080_v9 = vsel %vm544_vm3, %v1069_v6, %v3181_v20 }
 0x337   : > { %2409 = vmatprep.subr.bf16.mxu0 %v2408_v53  ;;  %v1081_v21 = vsel %vm544_vm3, %v3232_v17, %v3200_v63  ;;  %v1076_v24 = vsel %vm544_vm3, %v3181_v20, %v1069_v6  ;;  %v1057_v37 = vmul.f32 %v1050_v59, %v2825_v30  ;;  %v1085_v54 = vmul.f32 %v1080_v9, %v2847_v39 }
 0x338   : > { %2411 = vmatpush1.bf16.msra.mxu0 %v2410_v46  ;;  %v1054_v46 = vmul.f32 %v1045_v2, %v2822_v29  ;;  %v1077_v20 = vsel %vm544_vm3, %v3200_v63, %v3232_v17  ;;  %v1087_v6 = vmul.f32 %v1081_v21, %v2847_v39 }
 0x339   : > { %v1011_v0 = vpop.permute.xlu1 %1010  ;;  %2413 = vmatprep.subr.bf16.mxu0 %v2412_v50  ;;  %v3277_v3 = vpop.permute.xlu0 %1064  ;;  %v1056_v50 = vmul.f32 %v1046_v23, %v2822_v29 }
 0x33a   : > { %v1015_v27 = vsel %vm510_vm5, %v3165_v55, %v1011_v0  ;;  %v1019_v41 = vsel %vm510_vm5, %v1011_v0, %v3165_v55  ;;  %v1049_v55 = vsel %vm527_vm0, %v3159_v4, %v3136_v61  ;;  %v2430_v4 = vpack.c.bf16 %v1054_v46, %v1052_v62 }
 0x33b   : > { %v1026_v7 = vmul.f32 %v1019_v41, %v2860_v43  ;;  %v1027_v13 = vmul.f32 %v1015_v27, %v2869_v49  ;;  %v1055_v14 = vmul.f32 %v1049_v55, %v2825_v30  ;;  %v1084_v27 = vmul.f32 %v1076_v24, %v2844_v38 }
 0x33c   : > { %2415 = vmatpush1.bf16.msra.mxu0 %v2414_v5 }
 0x33d   : > { %v2418_v19 = vpack.c.bf16 %v1026_v7, %v1024_v51  ;;  %v3289_v15 = vpop.permute.xlu1 %1094  ;;  %v1073_v25 = vpop.permute.xlu0 %1072  ;;  %v2416_v12 = vpack.c.bf16 %v1027_v13, %v1025_v28  ;;  %v2428_v33 = vpack.c.bf16 %v1055_v14, %v1053_v1  ;;  %v1086_v13 = vmul.f32 %v1077_v20, %v2844_v38 }
 0x33e   : > { %v1078_v7 = vsel %vm544_vm3, %v3277_v3, %v1073_v25  ;;  %v1082_v63 = vsel %vm544_vm3, %v1073_v25, %v3277_v3 }
 0x33f   : > { %2417 = vmatprep.subr.bf16.mxu0 %v2416_v12  ;;  %v2438_v12 = vpack.c.bf16 %v1086_v13, %v1084_v27  ;;  %v1089_v14 = vmul.f32 %v1082_v63, %v2847_v39 }
 0x340   : > { %2419 = vmatpush1.bf16.msra.mxu0 %v2418_v19  ;;  %v2436_v19 = vpack.c.bf16 %v1087_v6, %v1085_v54 }
 0x341   : > { %v3297_v45 = vpop.permute.xlu1 %1102  ;;  %2421 = vmatprep.subr.bf16.mxu0 %v2420_v22  ;;  %v1093_v10 = vpop.permute.xlu0 %1092  ;;  %v1088_v22 = vmul.f32 %v1078_v7, %v2844_v38  ;;  %v4194_v7 = vld [vmem:[#allocation15_spill] sm:$0xff] }
 0x342   : > { %v1113_v2 = vsel %vm561_vm7, %v3297_v45, %v3289_v15 }
 0x343   : > { %v1119_v46 = vmul.f32 %v1113_v2, %v2885_v56 }
 0x344   : > { %2423 = vmatpush1.bf16.msra.mxu0 %v2422_v11 }
 0x345   : > { %v3318_v53 = vpop.permute.xlu1 %1098  ;;  %2425 = vmatprep.subr.bf16.mxu0 %v2424_v60  ;;  %v1101_v61 = vpop.permute.xlu0 %1100 }
 0x346   : > { %v1112_v17 = vsel %vm561_vm7, %v1101_v61, %v1093_v10  ;;  %v1108_v11 = vsel %vm561_vm7, %v1093_v10, %v1101_v61  ;;  %v1109_v10 = vsel %vm561_vm7, %v3289_v15, %v3297_v45 }
 0x347   : > { %v1117_v60 = vmul.f32 %v1112_v17, %v2885_v56  ;;  %v1116_v61 = vmul.f32 %v1108_v11, %v2877_v52  ;;  %v1118_v9 = vmul.f32 %v1109_v10, %v2877_v52  ;;  %v326_v10 = vld [vmem:[%s4137_s4 + $0x10] sm:$0xff] }
 0x348   : > { %2427 = vmatpush1.bf16.msra.mxu0 %v2426_v58 }
 0x349   : > { %v1043_v16 = vpop.permute.xlu1 %1042  ;;  %2429 = vmatprep.subr.bf16.mxu0 %v2428_v33  ;;  %v1097_v34 = vpop.permute.xlu0 %1096  ;;  %v2446_v21 = vpack.c.bf16 %v1118_v9, %v1116_v61  ;;  %v3443_v61 = vld [vmem:[%s4138_s5 + $0x28] sm:$0x1f] }
 0x34a   : > { %v1047_v47 = vsel %vm527_vm0, %v3169_v44, %v1043_v16  ;;  %v1051_v26 = vsel %vm527_vm0, %v1043_v16, %v3169_v44  ;;  %4197 = vst [vmem:[#allocation18_spill] sm:$0xff] %v3443_v61 }
 0x34b   : > { %v1058_v0 = vmul.f32 %v1047_v47, %v2822_v29  ;;  %v1059_v5 = vmul.f32 %v1051_v26, %v2825_v30 }
 0x34c   : > { %2431 = vmatpush1.bf16.msra.mxu0 %v2430_v4  ;;  %v2444_v4 = vpack.c.bf16 %v1119_v46, %v1117_v60  ;;  %v4195_v60 = vmov 0.0   ;;  %v3438_v46 = vld [vmem:[%s4138_s5 + $0x20] sm:$0x1f] }
 0x34d   : > { %v2434_v41 = vpack.c.bf16 %v1058_v0, %v1056_v50  ;;  %v1127_v44 = vpop.permute.xlu1 %1126  ;;  %v1105_v51 = vpop.permute.xlu0 %1104  ;;  %v2432_v28 = vpack.c.bf16 %v1059_v5, %v1057_v37  ;;  %v4193_v0 = vld [vmem:[#allocation16_spill] sm:$0xff]  ;;  %4196 = vst [vmem:[#allocation17_spill] sm:$0xff] %v3438_v46 }
 0x34e   : > { %v1110_v33 = vsel %vm561_vm7, %v1097_v34, %v1105_v51  ;;  %v1114_v59 = vsel %vm561_vm7, %v1105_v51, %v1097_v34 }
 0x34f   : > { %2433 = vmatprep.subr.bf16.mxu0 %v2432_v28  ;;  %v1120_v16 = vmul.f32 %v1110_v33, %v2877_v52  ;;  %v1121_v50 = vmul.f32 %v1114_v59, %v2885_v56  ;;  %v4163_v59 = vrot.slane %v3443_v61, 1 }
 0x350   : > { %2435 = vmatpush1.bf16.msra.mxu0 %v2434_v41 }
 0x351   : > { %v1075_v55 = vpop.permute.xlu1 %1074  ;;  %2437 = vmatprep.subr.bf16.mxu0 %v2436_v19  ;;  %v1125_v48 = vpop.permute.xlu0 %1124 }
 0x352   : > { %v1079_v3 = vsel %vm544_vm3, %v3267_v8, %v1075_v55  ;;  %v1083_v25 = vsel %vm544_vm3, %v1075_v55, %v3267_v8 }
 0x353   : > { %v1090_v57 = vmul.f32 %v1079_v3, %v2844_v38  ;;  %v1091_v1 = vmul.f32 %v1083_v25, %v2847_v39 }
 0x354   : > { %2439 = vmatpush1.bf16.msra.mxu0 %v2438_v12  ;;  %v324_v12 = vld [vmem:[%s4137_s4] sm:$0xff] }
 0x355   : > { %v2442_v58 = vpack.c.bf16 %v1090_v57, %v1088_v22  ;;  %v1135_v8 = vpop.permute.xlu1 %1134  ;;  %v1133_v62 = vpop.permute.xlu0 %1132  ;;  %v2440_v23 = vpack.c.bf16 %v1091_v1, %v1089_v14 }
 0x356   : > { %v1145_v15 = vsel %vm578_vm10, %v1135_v8, %v1127_v44  ;;  %v1144_v45 = vsel %vm578_vm10, %v1133_v62, %v1125_v48  ;;  %v1141_v34 = vsel %vm578_vm10, %v1127_v44, %v1135_v8  ;;  %v1140_v26 = vsel %vm578_vm10, %v1125_v48, %v1133_v62 }
 0x357   : > { %2441 = vmatprep.subr.bf16.mxu0 %v2440_v23  ;;  %v1151_v5 = vmul.f32 %v1145_v15, %v4193_v0  ;;  %v1149_v20 = vmul.f32 %v1144_v45, %v4193_v0  ;;  %v1150_v13 = vmul.f32 %v1141_v34, %v4194_v7  ;;  %v1148_v19 = vmul.f32 %v1140_v26, %v4194_v7  ;;  %v4199_v23 = vld [vmem:[#allocation14_spill] sm:$0xff] }
 0x358   : > { %2443 = vmatpush1.bf16.msra.mxu0 %v2442_v58  ;;  %v4198_v58 = vld [vmem:[#allocation13_spill] sm:$0xff]  ;;  %v4164_v62 = vrot.slane %v3438_v46, 1  ;;  %v1164_v33 = vrot.slane %v4199_v23, 1  ;;  %v308_v34 = vld [vmem:[%s294_s23] sm:$0xff] }
 0x359   : > { %v1107_v24 = vpop.permute.xlu1 %1106  ;;  %2445 = vmatprep.subr.bf16.mxu0 %v2444_v4  ;;  %v1129_v47 = vpop.permute.xlu0 %1128  ;;  %v2452_v63 = vpack.c.bf16 %v1151_v5, %v1149_v20  ;;  %v2454_v55 = vpack.c.bf16 %v1150_v13, %v1148_v19  ;;  %v1161_v8 = vrot.slane %v4198_v58, 1  ;;  %v4201_v5 = vld [vmem:[#allocation8_spill] sm:$0xff] }
 0x35a   : > { %v1111_v37 = vsel %vm561_vm7, %v3318_v53, %v1107_v24  ;;  %v1115_v54 = vsel %vm561_vm7, %v1107_v24, %v3318_v53  ;;  %v1166_v4 = vsel %vm1160_vm13, %v1164_v33, %v4163_v59  ;;  %v4200_v24 = vld [vmem:[#allocation2_spill] sm:$0xff]  ;;  %v345_v20 = vrot.slane %v308_v34, %v4201_v5 }
 0x35b   : > { %v1122_v6 = vmul.f32 %v1111_v37, %v2877_v52  ;;  %v1123_v27 = vmul.f32 %v1115_v54, %v2885_v56  ;;  %v1163_v9 = vsel %vm1160_vm13, %v1161_v8, %v4164_v62  ;;  %v4206_v8 = vld [vmem:[#allocation9_spill] sm:$0xff]  ;;  %v4207_v33 = vld [vmem:[#allocation10_spill] sm:$0xff]  ;;  %vm1515_vm13 = vcmask 326656  }
 0x35c   : > { %2447 = vmatpush1.bf16.msra.mxu0 %v2446_v21  ;;  %v355_v13 = vrot.slane %v345_v20, %v4201_v5  ;;  %v423_v23 = vrot.slane %v308_v34, %v4206_v8 }
 0x35d   : > { %v2450_v41 = vpack.c.bf16 %v1122_v6, %v1120_v16  ;;  %v1131_v44 = vpop.permute.xlu1 %1130  ;;  %v1137_v51 = vpop.permute.xlu0 %1136  ;;  %v2448_v28 = vpack.c.bf16 %v1123_v27, %v1121_v50 }
 0x35e   : > { %v1142_v53 = vsel %vm578_vm10, %v1129_v47, %v1137_v51  ;;  %v1146_v17 = vsel %vm578_vm10, %v1137_v51, %v1129_v47  ;;  %v348_v47 = vsub.s32 4, %v4200_v24 }
 0x35f   : > { %2449 = vmatprep.subr.bf16.mxu0 %v2448_v28  ;;  %v1152_v11 = vmul.f32 %v1142_v53, %v4194_v7  ;;  %v1153_v3 = vmul.f32 %v1146_v17, %v4193_v0  ;;  %v4203_v17 = vld [vmem:[#allocation4_spill] sm:$0xff] }
 0x360   : > { %2451 = vmatpush1.bf16.msra.mxu0 %v2450_v41  ;;  %v349_v27 = vrot.slane %v308_v34, %v348_v47 }
 0x361   : > { %v1139_v22 = vpop.permute.xlu1 %1138  ;;  %2453 = vmatprep.subr.bf16.mxu0 %v2452_v63  ;;  %v4202_v63 = vld [vmem:[#allocation6_spill] sm:$0xff] }
 0x362   : > { %v1143_v48 = vsel %vm578_vm10, %v1131_v44, %v1139_v22  ;;  %v1147_v2 = vsel %vm578_vm10, %v1139_v22, %v1131_v44  ;;  %v359_v19 = vrot.slane %v349_v27, %v4201_v5  ;;  %v371_v53 = vrot.slane %v308_v34, %v4202_v63 }
 0x363   : > { %v1154_v25 = vmul.f32 %v1143_v48, %v4194_v7  ;;  %v1155_v14 = vmul.f32 %v1147_v2, %v4193_v0  ;;  %1237 = vmatmul.mubr.f32.vlgmr.msra.gmra.mrb[16].mxu0 %v324_v12  ;;  %v375_v12 = vrot.slane %v308_v34, %v4203_v17  ;;  %v4205_v2 = vld [vmem:[#allocation7_spill] sm:$0xff] }
 0x364   : > { %2455 = vmatpush1.bf16.msra.mxu0 %v2454_v55  ;;  %1307 = vmatprep.mubr.f32.mxu0 %v4195_v60  ;;  %v4204_v55 = vld [vmem:[#allocation5_spill] sm:$0xff] }
 0x365   : > { %v2458_v57 = vpack.c.bf16 %v1154_v25, %v1152_v11  ;;  %v2456_v1 = vpack.c.bf16 %v1155_v14, %v1153_v3  ;;  %v397_v48 = vrot.slane %v308_v34, %v4204_v55  ;;  %v401_v11 = vrot.slane %v308_v34, %v4205_v2 }
 0x366   : > { %v381_v14 = vrot.slane %v371_v53, %v4202_v63 }
 0x367   : > { %2457 = vmatprep.subr.bf16.mxu0 %v2456_v1  ;;  %v411_v58 = vrot.slane %v401_v11, %v4204_v55 }
 0x368   : > { %2459 = vmatpush1.bf16.msra.mxu0 %v2458_v57  ;;  %v385_v57 = vrot.slane %v375_v12, %v4202_v63 }
 0x36b   : > { %2359 = vmatmul.mubr.msk.f32.vlgmr.msra.gmra.mrb[16].mxu0 %vm794_vm12, %v326_v10  ;;  %v407_v10 = vrot.slane %v397_v48, %v4204_v55  ;;  %v4208_v55 = vld [vmem:[#allocation3_spill] sm:$0xff] }
 0x36e   : > { %v339_v22 = vpop.permute.xlu0 %338 }
 0x36f   : > { %v360_v3 = vmul.f32 %v355_v13, %v339_v22  ;;  %v361_v25 = vmul.f32 %v359_v19, %v339_v22 }
 0x372   : > { %v334_v28 = vpop.permute.xlu1 %333 }
 0x373   : > { %v392_v47 = vpop.permute.xlu0 %391 }
 0x374   : > { %v412_v20 = vmul.f32 %v407_v10, %v392_v47  ;;  %v413_v13 = vmul.f32 %v411_v58, %v392_v47 }
 0x377   : > { %v366_v1 = vpop.permute.xlu1 %365 }
 0x378   : > { %v387_v24 = vmul.f32 %v385_v57, %v366_v1 }
 0x43e   : > { %v1309_v15 = vpop.f32.mrb[16].mxu0 }
 0x43f   : > { %v3459_v45 = vadd.f32 %v1309_v15, %v1163_v9  ;;  %v1311_v21 = vpop.f32.mrb[17].mxu0  ;;  %v427_v9 = vrot.slane %v308_v34, %v4207_v33  ;;  %v363_v15 = vadd.f32 %v361_v25, %v334_v28  ;;  %v418_v34 = vpop.permute.xlu1 %417 }
 0x440   : > { %v3461_v16 = vadd.f32 %v1311_v21, %v1166_v4  ;;  %v362_v4 = vadd.f32 %v360_v3, %v334_v28  ;;  %v386_v21 = vmul.f32 %v381_v14, %v366_v1  ;;  %v2627_v28 = vld [vmem:[%s2718_s29] sm:$0xf] }
 0x441   : > { %v3464_v50 = vadd.f32 2.0, %v3459_v45  ;;  %v437_v27 = vrot.slane %v427_v9, %v4206_v8  ;;  %v1380_v19 = vcombine.low %v2627_v28, %v2627_v28  ;;  %v1360_v25 = vrot.slane %v3459_v45, 4 }
 0x442   : > { %v3468_v26 = vadd.f32 2.0, %v3461_v16  ;;  %v1361_v14 = vrot.slane %v3461_v16, 4 }
 0x443   : > { %v1316_v37 = vand.u32 2147483647, %v3464_v50  ;;  %v439_v12 = vmul.f32 %v437_v27, %v418_v34  ;;  %v1387_v48 = vrot.slane %v1380_v19, %v4208_v55  ;;  %vm1330_vm14 = vcmp.ge.f32.partialorder %v3464_v50, 0.0  ;;  %v2631_v55 = vld [vmem:[%s4136_s3 + $0x30] sm:$0xff] }
 0x444   : > { %v1317_v54 = vand.u32 2147483647, %v3468_v26  ;;  %v1336_v9 = vmin.f32 %v3464_v50, 0.0  ;;  %vm1331_vm15 = vcmp.ge.f32.partialorder %v3468_v26, 0.0 }
 0x445   : > { %v1318_v6 = vsub.f32 0.0, %v1316_v37  ;;  %v1388_v58 = vcombine.high %v1387_v48, %v1387_v48 }
 0x446   : > { %v1319_v41 = vsub.f32 0.0, %v1317_v54 }
 0x447   : > { %v1320_v44 = vmul.f32 1.442695, %v1318_v6  ;;  %v433_v6 = vrot.slane %v423_v23, %v4206_v8 }
 0x448   : > { %v1322_v51 = vmul.f32 1.442695, %v1319_v41 }
 0x449   : > { %2603 = vpow2.f32 %v1320_v44  ;;  %v388_v44 = vadd.f32 %v386_v21, %v362_v4  ;;  %v438_v17 = vmul.f32 %v433_v6, %v418_v34 }
 0x44a   : > { %2605 = vpow2.f32 %v1322_v51  ;;  %v389_v51 = vadd.f32 %v387_v24, %v363_v15 }
 0x44b   : > { %v414_v63 = vadd.f32 %v412_v20, %v388_v44 }
 0x44c   : > { %v415_v53 = vadd.f32 %v413_v13, %v389_v51  ;;  %v1337_v51 = vmin.f32 %v3468_v26, 0.0 }
 0x44d   : > { %v440_v11 = vadd.f32 %v438_v17, %v414_v63  ;;  %v2628_v17 = vld [vmem:[%s4136_s3] sm:$0xff] }
 0x44e   : > { %v441_v3 = vadd.f32 %v439_v12, %v415_v53  ;;  %v2629_v12 = vld [vmem:[%s4136_s3 + $0x10] sm:$0xff] }
 0x44f   : > { %v1364_v21 = vadd.f32 %v1360_v25, %v440_v11  ;;  %v317_v11 = vld [vmem:[%s4136_s3 + $0x8] sm:$0xff] }
 0x450   : > { %v1365_v45 = vadd.f32 %v1361_v14, %v441_v3  ;;  %v319_v3 = vld [vmem:[%s4136_s3 + $0x18] sm:$0xff]  ;;  %v321_v25 = vld [vmem:[%s4136_s3 + $0x28] sm:$0xff] }
 0x451   : > { %v323_v14 = vld [vmem:[%s4136_s3 + $0x38] sm:$0xff] }
 0x453   : > { %v2604_v37 = vpop.eup %2603 }
 0x454   : > { %v2606_v54 = vpop.eup %2605  ;;  %v1324_v5 = vadd.f32 1.0, %v2604_v37  ;;  %v1341_v22 = vmul.f32 -0.5, %v2604_v37  ;;  %v1344_v1 = vand.u32 2147483647, %v2604_v37 }
 0x455   : > { %v1325_v41 = vadd.f32 1.0, %v2606_v54  ;;  %v1350_v2 = vmul.f32 -0.5, %v2606_v54  ;;  %v1353_v4 = vand.u32 2147483647, %v2606_v54 }
 0x456   : > { %2607 = vrcp.f32 %v1324_v5  ;;  %v1342_v57 = vadd.f32 1.0, %v1341_v22  ;;  %vm1345_vm9 = vcmp.lt.f32.partialorder %v1344_v1, 0.0004427343  ;;  %v2630_v22 = vld [vmem:[%s4136_s3 + $0x20] sm:$0xff] }
 0x457   : > { %2609 = vrcp.f32 %v1325_v41  ;;  %v1351_v8 = vadd.f32 1.0, %v1350_v2  ;;  %vm1354_vm11 = vcmp.lt.f32.partialorder %v1353_v4, 0.0004427343  ;;  %v4211_v2 = vmov 3  }
 0x458   : > { %2611 = vlog2.f32 %v1324_v5  ;;  %v1343_v20 = vmul.f32 %v2604_v37, %v1342_v57 }
 0x459   : > { %2613 = vlog2.f32 %v1325_v41  ;;  %v1352_v44 = vmul.f32 %v2606_v54, %v1351_v8 }
 0x460   : > { %v2608_v10 = vpop.eup %2607 }
 0x461   : > { %v2610_v23 = vpop.eup %2609  ;;  %v1332_v33 = vmul.f32 %v2608_v10, %v2604_v37 }
 0x462   : > { %v2612_v15 = vpop.eup %2611  ;;  %v1333_v24 = vmul.f32 %v2610_v23, %v2606_v54 }
 0x463   : > { %v2614_v47 = vpop.eup %2613  ;;  %v1334_v16 = vsel %vm1330_vm14, %v2608_v10, %v1332_v33  ;;  %v1340_v5 = vmul.f32 0.6931472, %v2612_v15 }
 0x464   : > { %v3494_v6 = vmul.f32 %v1364_v21, %v1334_v16  ;;  %v1335_v27 = vsel %vm1331_vm15, %v2610_v23, %v1333_v24  ;;  %v1349_v41 = vmul.f32 0.6931472, %v2614_v47 }
 0x465   : > { %v3497_v50 = vmul.f32 %v1365_v45, %v1335_v27  ;;  %v1346_v13 = vsel %vm1345_vm9, %v1343_v20, %v1340_v5 }
 0x466   : > { %4209 = vst [vmem:[#allocation13_spill] sm:$0xff] %v3494_v6  ;;  %v3501_v34 = vsel %vm627_vm6, %v3494_v6, %v1387_v48  ;;  %v1355_v28 = vsel %vm1354_vm11, %v1352_v44, %v1349_v41  ;;  %v1356_v19 = vsub.f32 %v1336_v9, %v1346_v13  ;;  %v2660_v48 = vmov 98  }
 0x467   : > { %4210 = vst [vmem:[#allocation14_spill] sm:$0xff] %v3497_v50  ;;  %v3505_v37 = vsel %vm627_vm6, %v3497_v50, %v1388_v58  ;;  %1401 = vrot.lane.b32.xlu1 %v3501_v34, %s2643_s8  ;;  %v1357_v54 = vsub.f32 %v1337_v51, %v1355_v28  ;;  %2599 = vset.pattern.permute.xlu0 %v2660_v48 }
 0x468   : > { %1403 = vrot.lane.b32.xlu0 %v3505_v37, %s2643_s8  ;;  %v1368_v26 = vsel %vm630_vm8, %v1356_v19, 0.0  ;;  %2598 = vset.pattern.permute.xlu1 %v2660_v48 }
 0x469   : > { %v1369_v63 = vsel %vm630_vm8, %v1357_v54, 0.0 }
 0x46a   : > { %v3513_v53 = vadd.f32 %v1369_v63, %v1368_v26 }
 0x46b   : > { %1417 = vrot.lane.b32.xlu1 %v3501_v34, %s2647_s12 }
 0x46c   : > { %1419 = vrot.lane.b32.xlu0 %v3505_v37, %s2647_s12 }
 0x46f   : > { %1393 = vrot.lane.b32.xlu1 %v3501_v34, %s2646_s11 }
 0x470   : > { %1395 = vrot.lane.b32.xlu0 %v3505_v37, %s2646_s11 }
 0x473   : > { %1409 = vrot.lane.b32.xlu1 %v3501_v34, %s2644_s9 }
 0x474   : > { %1411 = vrot.lane.b32.xlu0 %v3505_v37, %s2644_s9 }
 0x477   : > { %1425 = vrot.lane.b32.xlu1 %v3501_v34, %s2642_s30 }
 0x478   : > { %1427 = vrot.lane.b32.xlu0 %v3505_v37, %s2642_s30 }
 0x47b   : > { %1441 = vrot.lane.b32.xlu1 %v3501_v34, %s2648_s13 }
 0x47c   : > { %1443 = vrot.lane.b32.xlu0 %v3505_v37, %s2648_s13 }
 0x47f   : > { %1433 = vrot.lane.b32.xlu1 %v3501_v34, %s2645_s10 }
 0x480   : > { %1435 = vrot.lane.b32.xlu0 %v3505_v37, %s2645_s10 }
 0x483   : > { %1449 = vrot.lane.b32.xlu1 %v3501_v34, %s2650_s14 }
 0x484   : > { %1451 = vrot.lane.b32.xlu0 %v3505_v37, %s2650_s14 }
 0x487   : > { %1507 = vrot.lane.b32.xlu1 %v2628_v17, %s2659_s27 }
 0x488   : > { %1509 = vrot.lane.b32.xlu0 %v2629_v12, %s2659_s27 }
 0x48b   : > { %1511 = vrot.lane.b32.xlu1 %v2630_v22, %s2659_s27 }
 0x48c   : > { %1513 = vrot.lane.b32.xlu0 %v2631_v55, %s2659_s27 }
 0x48f   : > { %1492 = vperm.xlu1 %2598, %v2628_v17  }
 0x490   : > { %1496 = vperm.xlu0 %2599, %v2629_v12  }
 0x493   : > { %1500 = vperm.xlu1 %2598, %v2630_v22  }
 0x494   : > { %1641 = vrot.lane.b32.xlu0 %v2628_v17, %s2661_s21 }
 0x495   : > { %2600 = vset.pattern.permute.xlu0 %v4211_v2 }
 0x497   : > { %1504 = vperm.xlu1 %2598, %v2631_v55  }
 0x498   : > { %1645 = vrot.lane.b32.xlu0 %v2629_v12, %s2661_s21 }
 0x49b   : > { %1643 = vrot.lane.b32.xlu1 %v317_v11, %s2661_s21 }
 0x49c   : > { %1649 = vrot.lane.b32.xlu0 %v2630_v22, %s2661_s21  ;;  %2601 = vset.pattern.permute.xlu1 %v4211_v2 }
 0x49f   : > { %1647 = vrot.lane.b32.xlu1 %v319_v3, %s2661_s21 }
 0x4a0   : > { %1653 = vrot.lane.b32.xlu0 %v2631_v55, %s2661_s21 }
 0x4a3   : > { %1651 = vrot.lane.b32.xlu1 %v321_v25, %s2661_s21 }
 0x4a4   : > { %1623 = vperm.xlu0 %2600, %v317_v11  }
 0x4a7   : > { %1655 = vrot.lane.b32.xlu1 %v323_v14, %s2661_s21 }
 0x4a8   : > { %1638 = vperm.xlu0 %2600, %v323_v14  }
 0x4ab   : > { %1628 = vperm.xlu1 %2601, %v319_v3  }
 0x4af   : > { %1633 = vperm.xlu1 %2601, %v321_v25  }
 0x4d9   : > { %v1402_v57 = vpop.permute.xlu1 %1401 }
 0x4da   : > { %v1404_v1 = vpop.permute.xlu0 %1403 }
 0x4db   : > { %v1405_v8 = vsel %vm476_vm2, %v1402_v57, %v1404_v1  ;;  %v1406_v23 = vsel %vm476_vm2, %v1404_v1, %v1402_v57 }
 0x4dc   : > { %v1407_v21 = vmul.f32 %v1406_v23, %v2834_v35  ;;  %v1408_v24 = vmul.f32 %v1405_v8, %v2837_v36 }
 0x4dd   : > { %v1418_v10 = vpop.permute.xlu1 %1417 }
 0x4de   : > { %v1420_v58 = vpop.permute.xlu0 %1419  ;;  %v1459_v51 = vrot.slane %v1407_v21, 4  ;;  %v1460_v13 = vrot.slane %v1408_v24, 4 }
 0x4df   : > { %v1421_v33 = vsel %vm510_vm5, %v1418_v10, %v1420_v58  ;;  %v1422_v9 = vsel %vm510_vm5, %v1420_v58, %v1418_v10 }
 0x4e0   : > { %v1423_v16 = vmul.f32 %v1422_v9, %v2860_v43  ;;  %v1424_v5 = vmul.f32 %v1421_v33, %v2869_v49 }
 0x4e1   : > { %v1394_v4 = vpop.permute.xlu1 %1393 }
 0x4e2   : > { %v1396_v15 = vpop.permute.xlu0 %1395  ;;  %v1465_v54 = vrot.slane %v1423_v16, 4  ;;  %v1466_v26 = vrot.slane %v1424_v5, 4 }
 0x4e3   : > { %v1397_v45 = vsel %vm459_vm4, %v1394_v4, %v1396_v15  ;;  %v1398_v47 = vsel %vm459_vm4, %v1396_v15, %v1394_v4 }
 0x4e4   : > { %v1399_v27 = vmul.f32 %v1398_v47, %v2851_v40  ;;  %v1400_v41 = vmul.f32 %v1397_v45, %v2856_v42 }
 0x4e5   : > { %v1410_v20 = vpop.permute.xlu1 %1409 }
 0x4e6   : > { %v1412_v44 = vpop.permute.xlu0 %1411  ;;  %v1482_v55 = vsel %vm630_vm8, %v1400_v41, %v1460_v13  ;;  %v1481_v2 = vsel %vm630_vm8, %v1399_v27, %v1459_v51 }
 0x4e7   : > { %v1413_v28 = vsel %vm493_vm1, %v1410_v20, %v1412_v44  ;;  %v1414_v19 = vsel %vm493_vm1, %v1412_v44, %v1410_v20 }
 0x4e8   : > { %v1415_v63 = vmul.f32 %v1414_v19, %v2828_v31  ;;  %v1416_v17 = vmul.f32 %v1413_v28, %v2831_v32 }
 0x4e9   : > { %v1426_v12 = vpop.permute.xlu1 %1425 }
 0x4ea   : > { %v1428_v22 = vpop.permute.xlu0 %1427  ;;  %v1484_v48 = vsel %vm630_vm8, %v1416_v17, %v1466_v26  ;;  %v1483_v11 = vsel %vm630_vm8, %v1415_v63, %v1465_v54 }
 0x4eb   : > { %v1429_v3 = vsel %vm527_vm0, %v1426_v12, %v1428_v22  ;;  %v1430_v25 = vsel %vm527_vm0, %v1428_v22, %v1426_v12  ;;  %v2460_v14 = vpack.c.bf16 %v1484_v48, %v1482_v55  ;;  %v2462_v57 = vpack.c.bf16 %v1483_v11, %v1481_v2 }
 0x4ec   : > { %v1431_v10 = vmul.f32 %v1429_v3, %v2822_v29  ;;  %v1432_v58 = vmul.f32 %v1430_v25, %v2825_v30 }
 0x4ed   : > { %2461 = vmatprep.subr.bf16.mxu1 %v2460_v14  ;;  %v1442_v1 = vpop.permute.xlu1 %1441 }
 0x4ee   : > { %v1444_v8 = vpop.permute.xlu0 %1443  ;;  %2463 = vmatpush1.bf16.msra.mxu1 %v2462_v57  ;;  %v1471_v21 = vrot.slane %v1431_v10, 4  ;;  %v1472_v24 = vrot.slane %v1432_v58, 4 }
 0x4ef   : > { %v1445_v23 = vsel %vm561_vm7, %v1442_v1, %v1444_v8  ;;  %v1446_v33 = vsel %vm561_vm7, %v1444_v8, %v1442_v1 }
 0x4f0   : > { %v1447_v9 = vmul.f32 %v1445_v23, %v2877_v52  ;;  %v1448_v4 = vmul.f32 %v1446_v33, %v2885_v56  ;;  %v1486_v13 = vsel %vm630_vm8, %v3505_v37, %v1472_v24  ;;  %v1485_v19 = vsel %vm630_vm8, %v3501_v34, %v1471_v21 }
 0x4f1   : > { %v1434_v15 = vpop.permute.xlu1 %1433 }
 0x4f2   : > { %v1436_v45 = vpop.permute.xlu0 %1435  ;;  %v1477_v5 = vrot.slane %v1447_v9, 4  ;;  %v1478_v20 = vrot.slane %v1448_v4, 4 }
 0x4f3   : > { %v1437_v47 = vsel %vm544_vm3, %v1434_v15, %v1436_v45  ;;  %v1438_v16 = vsel %vm544_vm3, %v1436_v45, %v1434_v15 }
 0x4f4   : > { %v1439_v27 = vmul.f32 %v1437_v47, %v2844_v38  ;;  %v1440_v41 = vmul.f32 %v1438_v16, %v2847_v39 }
 0x4f5   : > { %v1450_v44 = vpop.permute.xlu1 %1449 }
 0x4f6   : > { %v1452_v51 = vpop.permute.xlu0 %1451  ;;  %v1488_v28 = vsel %vm630_vm8, %v1440_v41, %v1478_v20  ;;  %v1487_v54 = vsel %vm630_vm8, %v1439_v27, %v1477_v5 }
 0x4f7   : > { %v1454_v26 = vsel %vm578_vm10, %v1452_v51, %v1450_v44  ;;  %v2464_v63 = vpack.c.bf16 %v1488_v28, %v1486_v13  ;;  %v2466_v17 = vpack.c.bf16 %v1487_v54, %v1485_v19  ;;  %v1453_v22 = vsel %vm578_vm10, %v1450_v44, %v1452_v51 }
 0x4f8   : > { %v1456_v12 = vmul.f32 %v1454_v26, %v4193_v0  ;;  %v1455_v37 = vmul.f32 %v1453_v22, %v4194_v7 }
 0x4f9   : > { %2465 = vmatprep.subr.bf16.mxu1 %v2464_v63  ;;  %v1508_v55 = vpop.permute.xlu1 %1507 }
 0x4fa   : > { %2467 = vmatpush1.bf16.msra.mxu1 %v2466_v17  ;;  %v1510_v34 = vpop.permute.xlu0 %1509 }
 0x4fb   : > { %2360 = vmatprep.subr.msk.mxu1 %vm630_vm8, %v1456_v12 }
 0x4fd   : > { %v1512_v48 = vpop.permute.xlu1 %1511 }
 0x4fe   : > { %2361 = vmatpush1.msk.msra.mxu1 %vm630_vm8, %v1455_v37  ;;  %v1514_v2 = vpop.permute.xlu0 %1513  ;;  %vm1657_vm8 = vcmask 236544  }
 0x4ff   : > { %2362 = vmatmul.mubr.msk.f32.vlgmr.msra.gmra.mrb[0].mxu1 %vm1515_vm13, %v1508_v55 }
 0x500   : > { %1594 = vmatprep.mubr.f32.mxu1 %v4195_v60 }
 0x503   : > { %2363 = vmatmul.mubr.msk.f32.gmra.mrb[2].mxu1 %vm1515_vm13, %v1510_v34 }
 0x504   : > { %1600 = vmatprep.mubr.f32.mxu1 %v4195_v60 }
 0x507   : > { %2364 = vmatmul.mubr.msk.f32.gmra.mrb[4].mxu1 %vm1515_vm13, %v1512_v48 }
 0x508   : > { %1606 = vmatprep.mubr.f32.mxu1 %v4195_v60 }
 0x50b   : > { %2365 = vmatmul.mubr.msk.f32.gmra.mrb[6].mxu1 %vm1515_vm13, %v1514_v2 }
 0x50c   : > { %1734 = vmatprep.mubr.f32.mxu1 %v4195_v60 }
 0x50e   : > { %v1493_v11 = vpop.permute.xlu1 %1492 }
 0x50f   : > { %v1497_v57 = vpop.permute.xlu0 %1496 }
 0x512   : > { %v1501_v14 = vpop.permute.xlu1 %1500 }
 0x513   : > { %v1642_v27 = vpop.permute.xlu0 %1641 }
 0x516   : > { %v1505_v24 = vpop.permute.xlu1 %1504 }
 0x517   : > { %v1646_v37 = vpop.permute.xlu0 %1645 }
 0x51a   : > { %v1644_v51 = vpop.permute.xlu1 %1643 }
 0x51b   : > { %v1658_v34 = vsel %vm1657_vm8, %v1642_v27, %v1644_v51  ;;  %v1650_v48 = vpop.permute.xlu0 %1649 }
 0x51e   : > { %v1648_v55 = vpop.permute.xlu1 %1647 }
 0x522   : > { %v1652_v2 = vpop.permute.xlu1 %1651 }
 0x5d2   : > { %v1590_v3 = vpop.f32.mrb[0].mxu1 }
 0x5d3   : > { %v1592_v25 = vpop.f32.mrb[1].mxu1  ;;  %v1591_v1 = vadd.f32 %v1590_v3, %v1493_v11  ;;  %v1660_v3 = vsel %vm1657_vm8, %v1650_v48, %v1652_v2 }
 0x5d4   : > { %v1593_v10 = vadd.f32 %v1592_v25, %v1493_v11  ;;  %v1659_v11 = vsel %vm1657_vm8, %v1646_v37, %v1648_v55  ;;  %v1654_v25 = vpop.permute.xlu0 %1653  ;;  %v328_v37 = vld [vmem:[%s4137_s4 + $0x20] sm:$0xf] }
 0x5d5   : > { %v1613_v9 = vmax.f32 %v1591_v1, 0.0 }
 0x5d6   : > { %v1596_v58 = vpop.f32.mrb[2].mxu1  ;;  %v1614_v15 = vmax.f32 %v1593_v10, 0.0 }
 0x5d7   : > { %v1597_v8 = vadd.f32 %v1596_v58, %v1497_v57  ;;  %v1598_v23 = vpop.f32.mrb[3].mxu1 }
 0x5d8   : > { %v1599_v33 = vadd.f32 %v1598_v23, %v1497_v57  ;;  %v1624_v1 = vpop.permute.xlu0 %1623 }
 0x5d9   : > { %v1615_v4 = vmax.f32 %v1597_v8, 0.0 }
 0x5da   : > { %v1616_v21 = vmax.f32 %v1599_v33, 0.0  ;;  %v1602_v45 = vpop.f32.mrb[4].mxu1 }
 0x5db   : > { %v2470_v47 = vpack.c.bf16 %v1615_v4, %v1613_v9  ;;  %v1604_v16 = vpop.f32.mrb[5].mxu1  ;;  %v1603_v20 = vadd.f32 %v1602_v45, %v1501_v14 }
 0x5dc   : > { %v2468_v5 = vpack.c.bf16 %v1616_v21, %v1614_v15  ;;  %v1605_v41 = vadd.f32 %v1604_v16, %v1501_v14  ;;  %v1656_v14 = vpop.permute.xlu1 %1655 }
 0x5dd   : > { %v1617_v54 = vmax.f32 %v1603_v20, 0.0  ;;  %v1661_v57 = vsel %vm1657_vm8, %v1654_v25, %v1656_v14 }
 0x5de   : > { %v1608_v44 = vpop.f32.mrb[6].mxu1  ;;  %2469 = vmatprep.subr.bf16.mxu1 %v2468_v5  ;;  %v1618_v63 = vmax.f32 %v1605_v41, 0.0 }
 0x5df   : > { %v1609_v13 = vadd.f32 %v1608_v44, %v1505_v24  ;;  %v1610_v28 = vpop.f32.mrb[7].mxu1  ;;  %2471 = vmatpush1.bf16.msra.mxu1 %v2470_v47 }
 0x5e0   : > { %v1611_v19 = vadd.f32 %v1610_v28, %v1505_v24  ;;  %v1629_v9 = vpop.permute.xlu1 %1628 }
 0x5e1   : > { %v1619_v26 = vmax.f32 %v1609_v13, 0.0  ;;  %v1639_v13 = vpop.permute.xlu0 %1638 }
 0x5e2   : > { %v1620_v17 = vmax.f32 %v1611_v19, 0.0 }
 0x5e3   : > { %v2474_v12 = vpack.c.bf16 %v1619_v26, %v1617_v54 }
 0x5e4   : > { %v2472_v22 = vpack.c.bf16 %v1620_v17, %v1618_v63  ;;  %v1634_v44 = vpop.permute.xlu1 %1633 }
 0x5e6   : > { %2473 = vmatprep.subr.bf16.mxu1 %v2472_v22 }
 0x5e7   : > { %2475 = vmatpush1.bf16.msra.mxu1 %v2474_v12 }
 0x5ea   : > { %2366 = vmatmul.mubr.msk.f32.vlgmr.msra.gmra.mrb[8].mxu1 %vm794_vm12, %v1658_v34 }
 0x5eb   : > { %1740 = vmatprep.mubr.f32.mxu1 %v4195_v60 }
 0x5ee   : > { %2367 = vmatmul.mubr.msk.f32.gmra.mrb[10].mxu1 %vm794_vm12, %v1659_v11 }
 0x5ef   : > { %1746 = vmatprep.mubr.f32.mxu1 %v4195_v60 }
 0x5f2   : > { %2368 = vmatmul.mubr.msk.f32.gmra.mrb[12].mxu1 %vm794_vm12, %v1660_v3 }
 0x5f3   : > { %1752 = vmatprep.mubr.f32.mxu1 %v4195_v60 }
 0x5f6   : > { %2369 = vmatmul.mubr.msk.f32.gmra.mrb[14].mxu1 %vm794_vm12, %v1661_v57 }
 0x5f7   : > { %2092 = vmatprep.mubr.f32.mxu1 %v328_v37 }
 0x6bd   : > { %v1736_v10 = vpop.f32.mrb[8].mxu1 }
 0x6be   : > { %v1737_v58 = vadd.f32 %v1736_v10, %v1624_v1  ;;  %v1738_v8 = vpop.f32.mrb[9].mxu1 }
 0x6bf   : > { %v1739_v5 = vadd.f32 %v1738_v8, %v1624_v1 }
 0x6c0   : > { %v3644_v23 = vmax.f32 %v1737_v58, 0.0 }
 0x6c1   : > { %v1742_v33 = vpop.f32.mrb[10].mxu1  ;;  %v3666_v20 = vmax.f32 %v1739_v5, 0.0 }
 0x6c2   : > { %v1743_v4 = vadd.f32 %v1742_v33, %v1629_v9  ;;  %1767 = vrot.lane.b32.xlu1 %v3644_v23, %s2646_s11  ;;  %v1744_v15 = vpop.f32.mrb[11].mxu1 }
 0x6c3   : > { %v1745_v27 = vadd.f32 %v1744_v15, %v1629_v9 }
 0x6c4   : > { %v3648_v21 = vmax.f32 %v1743_v4, 0.0 }
 0x6c5   : > { %v1748_v24 = vpop.f32.mrb[12].mxu1  ;;  %v3672_v41 = vmax.f32 %v1745_v27, 0.0 }
 0x6c6   : > { %1799 = vrot.lane.b32.xlu1 %v3644_v23, %s2643_s8  ;;  %v1750_v45 = vpop.f32.mrb[13].mxu1  ;;  %1769 = vrot.lane.b32.xlu0 %v3648_v21, %s2646_s11  ;;  %v1749_v51 = vadd.f32 %v1748_v24, %v1634_v44 }
 0x6c7   : > { %v1751_v26 = vadd.f32 %v1750_v45, %v1634_v44 }
 0x6c8   : > { %v3690_v28 = vmax.f32 %v1749_v51, 0.0 }
 0x6c9   : > { %v1754_v47 = vpop.f32.mrb[14].mxu1  ;;  %v3714_v63 = vmax.f32 %v1751_v26, 0.0 }
 0x6ca   : > { %1831 = vrot.lane.b32.xlu1 %v3644_v23, %s2644_s9  ;;  %v1756_v16 = vpop.f32.mrb[15].mxu1  ;;  %1801 = vrot.lane.b32.xlu0 %v3648_v21, %s2643_s8  ;;  %v1755_v19 = vadd.f32 %v1754_v47, %v1639_v13 }
 0x6cb   : > { %v1757_v17 = vadd.f32 %v1756_v16, %v1639_v13 }
 0x6cc   : > { %v3696_v54 = vmax.f32 %v1755_v19, 0.0 }
 0x6cd   : > { %v3720_v12 = vmax.f32 %v1757_v17, 0.0 }
 0x6ce   : > { %1863 = vrot.lane.b32.xlu1 %v3644_v23, %s2647_s12  ;;  %1833 = vrot.lane.b32.xlu0 %v3648_v21, %s2644_s9 }
 0x6d2   : > { %1895 = vrot.lane.b32.xlu1 %v3644_v23, %s2642_s30  ;;  %1865 = vrot.lane.b32.xlu0 %v3648_v21, %s2647_s12 }
 0x6d6   : > { %1775 = vrot.lane.b32.xlu1 %v3666_v20, %s2646_s11  ;;  %1897 = vrot.lane.b32.xlu0 %v3648_v21, %s2642_s30 }
 0x6da   : > { %1807 = vrot.lane.b32.xlu1 %v3666_v20, %s2643_s8  ;;  %1777 = vrot.lane.b32.xlu0 %v3672_v41, %s2646_s11 }
 0x6de   : > { %1839 = vrot.lane.b32.xlu1 %v3666_v20, %s2644_s9  ;;  %1809 = vrot.lane.b32.xlu0 %v3672_v41, %s2643_s8 }
 0x6e2   : > { %1871 = vrot.lane.b32.xlu1 %v3666_v20, %s2647_s12  ;;  %1841 = vrot.lane.b32.xlu0 %v3672_v41, %s2644_s9 }
 0x6e6   : > { %1903 = vrot.lane.b32.xlu1 %v3666_v20, %s2642_s30  ;;  %1873 = vrot.lane.b32.xlu0 %v3672_v41, %s2647_s12 }
 0x6ea   : > { %1905 = vrot.lane.b32.xlu0 %v3672_v41, %s2642_s30  ;;  %1771 = vrot.lane.b32.xlu1 %v3690_v28, %s2646_s11 }
 0x6ee   : > { %1773 = vrot.lane.b32.xlu0 %v3696_v54, %s2646_s11  ;;  %1803 = vrot.lane.b32.xlu1 %v3690_v28, %s2643_s8 }
 0x6f2   : > { %1805 = vrot.lane.b32.xlu0 %v3696_v54, %s2643_s8  ;;  %1835 = vrot.lane.b32.xlu1 %v3690_v28, %s2644_s9 }
 0x6f6   : > { %1837 = vrot.lane.b32.xlu0 %v3696_v54, %s2644_s9  ;;  %1867 = vrot.lane.b32.xlu1 %v3690_v28, %s2647_s12 }
 0x6fa   : > { %1869 = vrot.lane.b32.xlu0 %v3696_v54, %s2647_s12  ;;  %1899 = vrot.lane.b32.xlu1 %v3690_v28, %s2642_s30 }
 0x6fe   : > { %1901 = vrot.lane.b32.xlu0 %v3696_v54, %s2642_s30  ;;  %1779 = vrot.lane.b32.xlu1 %v3714_v63, %s2646_s11 }
 0x702   : > { %1781 = vrot.lane.b32.xlu0 %v3720_v12, %s2646_s11  ;;  %1927 = vrot.lane.b32.xlu1 %v3644_v23, %s2645_s10 }
 0x706   : > { %1929 = vrot.lane.b32.xlu0 %v3648_v21, %s2645_s10  ;;  %1811 = vrot.lane.b32.xlu1 %v3714_v63, %s2643_s8 }
 0x70a   : > { %1813 = vrot.lane.b32.xlu0 %v3720_v12, %s2643_s8  ;;  %1843 = vrot.lane.b32.xlu1 %v3714_v63, %s2644_s9 }
 0x70e   : > { %1937 = vrot.lane.b32.xlu0 %v3672_v41, %s2645_s10  ;;  %1875 = vrot.lane.b32.xlu1 %v3714_v63, %s2647_s12 }
 0x712   : > { %1845 = vrot.lane.b32.xlu0 %v3720_v12, %s2644_s9  ;;  %1907 = vrot.lane.b32.xlu1 %v3714_v63, %s2642_s30 }
 0x716   : > { %1933 = vrot.lane.b32.xlu0 %v3696_v54, %s2645_s10  ;;  %1935 = vrot.lane.b32.xlu1 %v3666_v20, %s2645_s10 }
 0x71a   : > { %1877 = vrot.lane.b32.xlu0 %v3720_v12, %s2647_s12  ;;  %1931 = vrot.lane.b32.xlu1 %v3690_v28, %s2645_s10 }
 0x71e   : > { %1961 = vrot.lane.b32.xlu0 %v3648_v21, %s2648_s13  ;;  %1939 = vrot.lane.b32.xlu1 %v3714_v63, %s2645_s10 }
 0x722   : > { %1969 = vrot.lane.b32.xlu0 %v3672_v41, %s2648_s13  ;;  %1959 = vrot.lane.b32.xlu1 %v3644_v23, %s2648_s13 }
 0x726   : > { %1965 = vrot.lane.b32.xlu0 %v3696_v54, %s2648_s13  ;;  %1967 = vrot.lane.b32.xlu1 %v3666_v20, %s2648_s13 }
 0x72a   : > { %1909 = vrot.lane.b32.xlu0 %v3720_v12, %s2642_s30  ;;  %1963 = vrot.lane.b32.xlu1 %v3690_v28, %s2648_s13 }
 0x72e   : > { %1993 = vrot.lane.b32.xlu0 %v3648_v21, %s2650_s14  ;;  %1971 = vrot.lane.b32.xlu1 %v3714_v63, %s2648_s13 }
 0x732   : > { %1941 = vrot.lane.b32.xlu0 %v3720_v12, %s2645_s10  ;;  %1991 = vrot.lane.b32.xlu1 %v3644_v23, %s2650_s14 }
 0x734   : > { %v1768_v22 = vpop.permute.xlu1 %1767 }
 0x736   : > { %2001 = vrot.lane.b32.xlu0 %v3672_v41, %s2650_s14  ;;  %1999 = vrot.lane.b32.xlu1 %v3666_v20, %s2650_s14 }
 0x738   : > { %v1770_v55 = vpop.permute.xlu0 %1769  ;;  %v3781_v34 = vpop.permute.xlu1 %1799 }
 0x73a   : > { %1973 = vrot.lane.b32.xlu0 %v3720_v12, %s2648_s13  ;;  %1995 = vrot.lane.b32.xlu1 %v3690_v28, %s2650_s14 }
 0x73c   : > { %v3787_v48 = vpop.permute.xlu0 %1801  ;;  %v3789_v2 = vpop.permute.xlu1 %1831 }
 0x73e   : > { %1997 = vrot.lane.b32.xlu0 %v3696_v54, %s2650_s14  ;;  %2003 = vrot.lane.b32.xlu1 %v3714_v63, %s2650_s14 }
 0x740   : > { %v3795_v11 = vpop.permute.xlu0 %1833  ;;  %v1864_v3 = vpop.permute.xlu1 %1863 }
 0x742   : > { %2005 = vrot.lane.b32.xlu0 %v3720_v12, %s2650_s14 }
 0x744   : > { %v1866_v25 = vpop.permute.xlu0 %1865  ;;  %v1896_v14 = vpop.permute.xlu1 %1895 }
 0x748   : > { %v1898_v57 = vpop.permute.xlu0 %1897  ;;  %v1776_v1 = vpop.permute.xlu1 %1775 }
 0x749   : > { %v1783_v10 = vsel %vm459_vm4, %v1768_v22, %v1776_v1  ;;  %v1787_v58 = vsel %vm459_vm4, %v1776_v1, %v1768_v22 }
 0x74a   : > { %v1791_v15 = vmul.f32 %v1787_v58, %v2851_v40  ;;  %v1792_v24 = vmul.f32 %v1783_v10, %v2856_v42 }
 0x74c   : > { %v1778_v8 = vpop.permute.xlu0 %1777  ;;  %v3803_v33 = vpop.permute.xlu1 %1807 }
 0x74d   : > { %v1784_v9 = vsel %vm459_vm4, %v1770_v55, %v1778_v8  ;;  %v1788_v4 = vsel %vm459_vm4, %v1778_v8, %v1770_v55 }
 0x74e   : > { %v1793_v45 = vmul.f32 %v1788_v4, %v2851_v40  ;;  %v1794_v47 = vmul.f32 %v1784_v9, %v2856_v42 }
 0x750   : > { %v2478_v16 = vpack.c.bf16 %v1793_v45, %v1791_v15  ;;  %v1810_v5 = vpop.permute.xlu0 %1809  ;;  %v3813_v27 = vpop.permute.xlu1 %1839  ;;  %v2476_v44 = vpack.c.bf16 %v1794_v47, %v1792_v24 }
 0x751   : > { %v1851_v51 = vsel %vm493_vm1, %v3813_v27, %v3789_v2  ;;  %v1820_v6 = vsel %vm476_vm2, %v1810_v5, %v3787_v48 }
 0x752   : > { %2477 = vmatprep.subr.bf16.mxu1 %v2476_v44  ;;  %v3826_v17 = vmul.f32 %v1851_v51, %v2828_v31  ;;  %v1815_v51 = vsel %vm476_vm2, %v3781_v34, %v3803_v33 }
 0x753   : > { %2479 = vmatpush1.bf16.msra.mxu1 %v2478_v16 }
 0x754   : > { %v3819_v13 = vpop.permute.xlu0 %1841  ;;  %v1872_v19 = vpop.permute.xlu1 %1871 }
 0x755   : > { %v1852_v26 = vsel %vm493_vm1, %v3819_v13, %v3795_v11  ;;  %v1879_v37 = vsel %vm510_vm5, %v1864_v3, %v1872_v19  ;;  %v1883_v55 = vsel %vm510_vm5, %v1872_v19, %v1864_v3 }
 0x756   : > { %v3829_v22 = vmul.f32 %v1852_v26, %v2828_v31  ;;  %v3842_v4 = vmul.f32 %v1883_v55, %v2860_v43  ;;  %v3845_v15 = vmul.f32 %v1879_v37, %v2869_v49 }
 0x758   : > { %v1874_v10 = vpop.permute.xlu0 %1873  ;;  %v1904_v58 = vpop.permute.xlu1 %1903 }
 0x759   : > { %v1880_v8 = vsel %vm510_vm5, %v1866_v25, %v1874_v10  ;;  %v1884_v9 = vsel %vm510_vm5, %v1874_v10, %v1866_v25  ;;  %v1911_v45 = vsel %vm527_vm0, %v1896_v14, %v1904_v58  ;;  %v1915_v47 = vsel %vm527_vm0, %v1904_v58, %v1896_v14 }
 0x75a   : > { %v3848_v24 = vmul.f32 %v1884_v9, %v2860_v43  ;;  %v3851_v3 = vmul.f32 %v1880_v8, %v2869_v49  ;;  %v3866_v37 = vmul.f32 %v1911_v45, %v2822_v29  ;;  %v3869_v55 = vmul.f32 %v1915_v47, %v2825_v30 }
 0x75b   : > { %v1816_v58 = vsel %vm476_vm2, %v3787_v48, %v1810_v5  ;;  %v1819_v48 = vsel %vm476_vm2, %v3803_v33, %v3781_v34  ;;  %v1824_v5 = vmul.f32 %v1815_v51, %v2837_v36 }
 0x75c   : > { %v1906_v16 = vpop.permute.xlu0 %1905  ;;  %v1772_v44 = vpop.permute.xlu1 %1771  ;;  %v1826_v61 = vmul.f32 %v1816_v58, %v2837_v36 }
 0x75d   : > { %v1912_v19 = vsel %vm527_vm0, %v1898_v57, %v1906_v16  ;;  %v1916_v26 = vsel %vm527_vm0, %v1906_v16, %v1898_v57 }
 0x75e   : > { %v3872_v14 = vmul.f32 %v1912_v19, %v2822_v29  ;;  %v3875_v10 = vmul.f32 %v1916_v26, %v2825_v30 }
 0x760   : > { %v1774_v8 = vpop.permute.xlu0 %1773  ;;  %v1804_v9 = vpop.permute.xlu1 %1803 }
 0x762   : > { %1371 = vadd.xlane.f32.xlu1 %v3513_v53 }
 0x764   : > { %v1806_v45 = vpop.permute.xlu0 %1805  ;;  %v1836_v16 = vpop.permute.xlu1 %1835 }
 0x768   : > { %v1838_v47 = vpop.permute.xlu0 %1837  ;;  %v3882_v59 = vpop.permute.xlu1 %1867 }
 0x76c   : > { %v3884_v19 = vpop.permute.xlu0 %1869  ;;  %v3886_v62 = vpop.permute.xlu1 %1899 }
 0x770   : > { %v3888_v26 = vpop.permute.xlu0 %1901  ;;  %v1780_v25 = vpop.permute.xlu1 %1779 }
 0x771   : > { %v1785_v57 = vsel %vm459_vm4, %v1772_v44, %v1780_v25  ;;  %v1789_v53 = vsel %vm459_vm4, %v1780_v25, %v1772_v44 }
 0x772   : > { %v1795_v44 = vmul.f32 %v1789_v53, %v2851_v40  ;;  %v1796_v60 = vmul.f32 %v1785_v57, %v2856_v42 }
 0x774   : > { %v1782_v1 = vpop.permute.xlu0 %1781  ;;  %v3901_v50 = vpop.permute.xlu1 %1927 }
 0x775   : > { %v1786_v46 = vsel %vm459_vm4, %v1774_v8, %v1782_v1  ;;  %v1790_v25 = vsel %vm459_vm4, %v1782_v1, %v1774_v8  ;;  %v1825_v8 = vmul.f32 %v1820_v6, %v2834_v35 }
 0x776   : > { %v1797_v7 = vmul.f32 %v1790_v25, %v2851_v40  ;;  %v1798_v0 = vmul.f32 %v1786_v46, %v2856_v42  ;;  %v1848_v40 = vsel %vm493_vm1, %v3795_v11, %v3819_v13  ;;  %v2484_v42 = vpack.c.bf16 %v1826_v61, %v1824_v5 }
 0x777   : > { %v1823_v46 = vmul.f32 %v1819_v48, %v2834_v35  ;;  %v1858_v61 = vmul.f32 %v1848_v40, %v2831_v32 }
 0x778   : > { %v2482_v58 = vpack.c.bf16 %v1797_v7, %v1795_v44  ;;  %v3920_v52 = vpop.permute.xlu0 %1929  ;;  %v1812_v56 = vpop.permute.xlu1 %1811  ;;  %v2480_v1 = vpack.c.bf16 %v1798_v0, %v1796_v60  ;;  %v1847_v0 = vsel %vm493_vm1, %v3789_v2, %v3813_v27 }
 0x779   : > { %v1817_v34 = vsel %vm476_vm2, %v1804_v9, %v1812_v56  ;;  %v1821_v7 = vsel %vm476_vm2, %v1812_v56, %v1804_v9  ;;  %v2486_v11 = vpack.c.bf16 %v1825_v8, %v1823_v46  ;;  %v1856_v27 = vmul.f32 %v1847_v0, %v2831_v32 }
 0x77a   : > { %2481 = vmatprep.subr.bf16.mxu1 %v2480_v1  ;;  %v1827_v56 = vmul.f32 %v1821_v7, %v2834_v35  ;;  %v1828_v51 = vmul.f32 %v1817_v34, %v2837_v36 }
 0x77b   : > { %2483 = vmatpush1.bf16.msra.mxu1 %v2482_v58  ;;  %v2492_v48 = vpack.c.bf16 %v1858_v61, %v1856_v27 }
 0x77c   : > { %v1814_v60 = vpop.permute.xlu0 %1813  ;;  %2485 = vmatprep.subr.bf16.mxu1 %v2484_v42  ;;  %v1844_v6 = vpop.permute.xlu1 %1843 }
 0x77d   : > { %v1818_v33 = vsel %vm476_vm2, %v1806_v45, %v1814_v60  ;;  %v1822_v13 = vsel %vm476_vm2, %v1814_v60, %v1806_v45  ;;  %v1849_v45 = vsel %vm493_vm1, %v1836_v16, %v1844_v6  ;;  %v1853_v5 = vsel %vm493_vm1, %v1844_v6, %v1836_v16 }
 0x77e   : > { %v1829_v9 = vmul.f32 %v1822_v13, %v2834_v35  ;;  %v1830_v2 = vmul.f32 %v1818_v33, %v2837_v36  ;;  %v1859_v8 = vmul.f32 %v1853_v5, %v2828_v31  ;;  %v1860_v40 = vmul.f32 %v1849_v45, %v2831_v32 }
 0x77f   : > { %2487 = vmatpush1.bf16.msra.mxu1 %v2486_v11  ;;  %v4212_v16 = vpack.c.bf16 %v3829_v22, %v3826_v17  ;;  %v4213_v17 = vpack.c.bf16 %v3851_v3, %v3845_v15  ;;  %v4214_v15 = vpack.c.bf16 %v3848_v24, %v3842_v4  ;;  %v4216_v5 = vpack.c.bf16 %v3872_v14, %v3866_v37 }
 0x780   : > { %v2490_v57 = vpack.c.bf16 %v1829_v9, %v1827_v56  ;;  %v3946_v53 = vpop.permute.xlu0 %1937  ;;  %v1876_v25 = vpop.permute.xlu1 %1875  ;;  %v2488_v44 = vpack.c.bf16 %v1830_v2, %v1828_v51 }
 0x782   : > { %2489 = vmatprep.subr.bf16.mxu1 %v2488_v44 }
 0x783   : > { %2491 = vmatpush1.bf16.msra.mxu1 %v2490_v57  ;;  %v2514_v57 = vpack.c.bf16 %v3696_v54, %v3690_v28  ;;  %v4215_v28 = vpack.c.bf16 %v3875_v10, %v3869_v55 }
 0x784   : > { %v1846_v35 = vpop.permute.xlu0 %1845  ;;  %2493 = vmatprep.subr.bf16.mxu1 %v2492_v48  ;;  %v1908_v36 = vpop.permute.xlu1 %1907 }
 0x785   : > { %v1850_v58 = vsel %vm493_vm1, %v1838_v47, %v1846_v35  ;;  %v1854_v1 = vsel %vm493_vm1, %v1846_v35, %v1838_v47  ;;  %v1881_v47 = vsel %vm510_vm5, %v3882_v59, %v1876_v25 }
 0x786   : > { %v1861_v42 = vmul.f32 %v1854_v1, %v2828_v31  ;;  %v1862_v46 = vmul.f32 %v1850_v58, %v2831_v32  ;;  %v1885_v31 = vsel %vm510_vm5, %v1876_v25, %v3882_v59  ;;  %v1892_v33 = vmul.f32 %v1881_v47, %v2869_v49 }
 0x787   : > { %2495 = vmatpush1.bf16.msra.mxu1 %v4212_v16  ;;  %v1891_v61 = vmul.f32 %v1885_v31, %v2860_v43  ;;  %v4217_v31 = vld [vmem:[#allocation12_spill] sm:$0xff] }
 0x788   : > { %v2498_v34 = vpack.c.bf16 %v1861_v42, %v1859_v8  ;;  %v3963_v7 = vpop.permute.xlu0 %1933  ;;  %v1936_v0 = vpop.permute.xlu1 %1935  ;;  %v2496_v60 = vpack.c.bf16 %v1862_v46, %v1860_v40 }
 0x78a   : > { %2497 = vmatprep.subr.bf16.mxu1 %v2496_v60 }
 0x78b   : > { %2499 = vmatpush1.bf16.msra.mxu1 %v2498_v34 }
 0x78c   : > { %v1878_v32 = vpop.permute.xlu0 %1877  ;;  %2501 = vmatprep.subr.bf16.mxu1 %v4213_v17  ;;  %v1932_v22 = vpop.permute.xlu1 %1931 }
 0x78d   : > { %v1882_v6 = vsel %vm510_vm5, %v3884_v19, %v1878_v32  ;;  %v1886_v11 = vsel %vm510_vm5, %v1878_v32, %v3884_v19  ;;  %v2508_v19 = vpack.c.bf16 %v3672_v41, %v3666_v20  ;;  %v1913_v20 = vsel %vm527_vm0, %v3886_v62, %v1908_v36 }
 0x78e   : > { %v1893_v59 = vmul.f32 %v1886_v11, %v2860_v43  ;;  %v1894_v13 = vmul.f32 %v1882_v6, %v2869_v49  ;;  %v2510_v43 = vpack.c.bf16 %v3648_v21, %v3644_v23  ;;  %v2512_v49 = vpack.c.bf16 %v3720_v12, %v3714_v63 }
 0x78f   : > { %2503 = vmatpush1.bf16.msra.mxu1 %v4214_v15  ;;  %v1917_v41 = vsel %vm527_vm0, %v1908_v36, %v3886_v62  ;;  %v1947_v23 = vsel %vm544_vm3, %v1936_v0, %v3901_v50  ;;  %v1948_v21 = vsel %vm544_vm3, %v3946_v53, %v3920_v52  ;;  %v1923_v12 = vmul.f32 %v1913_v20, %v2822_v29 }
 0x790   : > { %v2506_v3 = vpack.c.bf16 %v1893_v59, %v1891_v61  ;;  %v1962_v56 = vpop.permute.xlu0 %1961  ;;  %v1940_v51 = vpop.permute.xlu1 %1939  ;;  %v2504_v9 = vpack.c.bf16 %v1894_v13, %v1892_v33  ;;  %v1943_v62 = vsel %vm544_vm3, %v3901_v50, %v1936_v0  ;;  %v1924_v48 = vmul.f32 %v1917_v41, %v2825_v30  ;;  %v4218_v61 = vld [vmem:[#allocation11_spill] sm:$0xff] }
 0x791   : > { %v1952_v55 = vmul.f32 %v1947_v23, %v2847_v39  ;;  %v1944_v50 = vsel %vm544_vm3, %v3920_v52, %v3946_v53  ;;  %v1954_v35 = vmul.f32 %v1948_v21, %v2847_v39  ;;  %v1949_v52 = vsel %vm544_vm3, %v1940_v51, %v1932_v22  ;;  %v4219_v23 = vld [vmem:[#allocation16_spill] sm:$0xff] }
 0x792   : > { %2505 = vmatprep.subr.bf16.mxu1 %v2504_v9  ;;  %v1956_v47 = vmul.f32 %v1949_v52, %v2847_v39 }
 0x793   : > { %2507 = vmatpush1.bf16.msra.mxu1 %v2506_v3  ;;  %v2524_v40 = vpack.c.bf16 %v1954_v35, %v1952_v55 }
 0x794   : > { %v1970_v2 = vpop.permute.xlu0 %1969  ;;  %2509 = vmatprep.subr.bf16.mxu1 %v2508_v19  ;;  %v1960_v27 = vpop.permute.xlu1 %1959 }
 0x795   : > { %v1980_v16 = vsel %vm561_vm7, %v1970_v2, %v1962_v56  ;;  %v1976_v6 = vsel %vm561_vm7, %v1962_v56, %v1970_v2 }
 0x796   : > { %v1986_v11 = vmul.f32 %v1980_v16, %v4217_v31 }
 0x797   : > { %2511 = vmatpush1.bf16.msra.mxu1 %v2510_v43 }
 0x798   : > { %v3993_v4 = vpop.permute.xlu0 %1965  ;;  %2513 = vmatprep.subr.bf16.mxu1 %v2512_v49  ;;  %v1968_v24 = vpop.permute.xlu1 %1967 }
 0x799   : > { %v1979_v37 = vsel %vm561_vm7, %v1968_v24, %v1960_v27  ;;  %v1975_v34 = vsel %vm561_vm7, %v1960_v27, %v1968_v24 }
 0x79a   : > { %v1984_v32 = vmul.f32 %v1979_v37, %v4217_v31  ;;  %v1983_v33 = vmul.f32 %v1975_v34, %v4218_v61 }
 0x79b   : > { %2515 = vmatpush1.bf16.msra.mxu1 %v2514_v57 }
 0x79c   : > { %v1910_v63 = vpop.permute.xlu0 %1909  ;;  %2517 = vmatprep.subr.bf16.mxu1 %v4215_v28  ;;  %v1964_v54 = vpop.permute.xlu1 %1963 }
 0x79d   : > { %v1914_v25 = vsel %vm527_vm0, %v3888_v26, %v1910_v63  ;;  %v1918_v44 = vsel %vm527_vm0, %v1910_v63, %v3888_v26  ;;  %v1951_v26 = vmul.f32 %v1943_v62, %v2844_v38 }
 0x79e   : > { %v1925_v10 = vmul.f32 %v1914_v25, %v2822_v29  ;;  %v1926_v45 = vmul.f32 %v1918_v44, %v2825_v30  ;;  %v1945_v29 = vsel %vm544_vm3, %v1932_v22, %v1940_v51  ;;  %v1953_v30 = vmul.f32 %v1944_v50, %v2844_v38 }
 0x79f   : > { %2519 = vmatpush1.bf16.msra.mxu1 %v4216_v5  ;;  %v1955_v53 = vmul.f32 %v1945_v29, %v2844_v38  ;;  %v2532_v51 = vpack.c.bf16 %v1986_v11, %v1984_v32  ;;  %v327_v5 = vld [vmem:[%s4137_s4 + $0x18] sm:$0xf] }
 0x7a0   : > { %v2522_v36 = vpack.c.bf16 %v1925_v10, %v1923_v12  ;;  %v1994_v58 = vpop.permute.xlu0 %1993  ;;  %v1972_v1 = vpop.permute.xlu1 %1971  ;;  %v2520_v8 = vpack.c.bf16 %v1926_v45, %v1924_v48  ;;  %v2526_v14 = vpack.c.bf16 %v1953_v30, %v1951_v26  ;;  %v4220_v48 = vld [vmem:[#allocation15_spill] sm:$0xff] }
 0x7a1   : > { %v1977_v3 = vsel %vm561_vm7, %v1964_v54, %v1972_v1 }
 0x7a2   : > { %2521 = vmatprep.subr.bf16.mxu1 %v2520_v8  ;;  %v1987_v2 = vmul.f32 %v1977_v3, %v4218_v61 }
 0x7a3   : > { %2523 = vmatpush1.bf16.msra.mxu1 %v2522_v36 }
 0x7a4   : > { %v1942_v42 = vpop.permute.xlu0 %1941  ;;  %2525 = vmatprep.subr.bf16.mxu1 %v2524_v40  ;;  %v1992_v46 = vpop.permute.xlu1 %1991  ;;  %v4221_v40 = vmov 0.0  }
 0x7a5   : > { %v1946_v0 = vsel %vm544_vm3, %v3963_v7, %v1942_v42  ;;  %v1950_v60 = vsel %vm544_vm3, %v1942_v42, %v3963_v7 }
 0x7a6   : > { %v1957_v17 = vmul.f32 %v1946_v0, %v2844_v38  ;;  %v1958_v22 = vmul.f32 %v1950_v60, %v2847_v39  ;;  %v1981_v38 = vsel %vm561_vm7, %v1972_v1, %v1964_v54  ;;  %v1985_v39 = vmul.f32 %v1976_v6, %v4218_v61 }
 0x7a7   : > { %2527 = vmatpush1.bf16.msra.mxu1 %v2526_v14  ;;  %v1988_v27 = vmul.f32 %v1981_v38, %v4217_v31 }
 0x7a8   : > { %v2530_v59 = vpack.c.bf16 %v1957_v17, %v1955_v53  ;;  %v2002_v13 = vpop.permute.xlu0 %2001  ;;  %v2000_v15 = vpop.permute.xlu1 %1999  ;;  %v2528_v7 = vpack.c.bf16 %v1958_v22, %v1956_v47  ;;  %v2534_v19 = vpack.c.bf16 %v1985_v39, %v1983_v33  ;;  %v4222_v47 = vld [vmem:[#allocation17_spill] sm:$0xff]  ;;  %v4224_v22 = vld [vmem:[#allocation18_spill] sm:$0xff] }
 0x7a9   : > { %v2012_v56 = vsel %vm578_vm10, %v2002_v13, %v1994_v58  ;;  %v2011_v9 = vsel %vm578_vm10, %v2000_v15, %v1992_v46  ;;  %v2008_v24 = vsel %vm578_vm10, %v1994_v58, %v2002_v13  ;;  %v2007_v57 = vsel %vm578_vm10, %v1992_v46, %v2000_v15 }
 0x7aa   : > { %2529 = vmatprep.subr.bf16.mxu1 %v2528_v7  ;;  %v2018_v21 = vmul.f32 %v2012_v56, %v4219_v23  ;;  %v2016_v63 = vmul.f32 %v2011_v9, %v4219_v23  ;;  %v2017_v55 = vmul.f32 %v2008_v24, %v4220_v48  ;;  %v2015_v10 = vmul.f32 %v2007_v57, %v4220_v48 }
 0x7ab   : > { %2531 = vmatpush1.bf16.msra.mxu1 %v2530_v59  ;;  %v4225_v6 = vrot.slane %v4224_v22, 1 }
 0x7ac   : > { %v1974_v43 = vpop.permute.xlu0 %1973  ;;  %2533 = vmatprep.subr.bf16.mxu1 %v2532_v51  ;;  %v1996_v49 = vpop.permute.xlu1 %1995  ;;  %v2540_v45 = vpack.c.bf16 %v2018_v21, %v2016_v63  ;;  %v2542_v26 = vpack.c.bf16 %v2017_v55, %v2015_v10  ;;  %v4227_v21 = vld [vmem:[#allocation14_spill] sm:$0xff] }
 0x7ad   : > { %v1978_v20 = vsel %vm561_vm7, %v3993_v4, %v1974_v43  ;;  %v1982_v41 = vsel %vm561_vm7, %v1974_v43, %v3993_v4 }
 0x7ae   : > { %v1989_v28 = vmul.f32 %v1978_v20, %v4218_v61  ;;  %v1990_v54 = vmul.f32 %v1982_v41, %v4217_v31  ;;  %v4223_v31 = vrot.slane %v4222_v47, 1  ;;  %v4226_v41 = vld [vmem:[#allocation13_spill] sm:$0xff] }
 0x7af   : > { %2535 = vmatpush1.bf16.msra.mxu1 %v2534_v19 }
 0x7b0   : > { %v2538_v12 = vpack.c.bf16 %v1989_v28, %v1987_v2  ;;  %v1998_v62 = vpop.permute.xlu0 %1997  ;;  %v2004_v25 = vpop.permute.xlu1 %2003  ;;  %v2536_v44 = vpack.c.bf16 %v1990_v54, %v1988_v27 }
 0x7b1   : > { %v2009_v4 = vsel %vm578_vm10, %v1996_v49, %v2004_v25  ;;  %v2013_v50 = vsel %vm578_vm10, %v2004_v25, %v1996_v49 }
 0x7b2   : > { %2537 = vmatprep.subr.bf16.mxu1 %v2536_v44  ;;  %v2019_v1 = vmul.f32 %v2009_v4, %v4220_v48  ;;  %v2020_v8 = vmul.f32 %v2013_v50, %v4219_v23 }
 0x7b3   : > { %2539 = vmatpush1.bf16.msra.mxu1 %v2538_v12 }
 0x7b4   : > { %v2006_v35 = vpop.permute.xlu0 %2005  ;;  %2541 = vmatprep.subr.bf16.mxu1 %v2540_v45 }
 0x7b5   : > { %v2010_v36 = vsel %vm578_vm10, %v1998_v62, %v2006_v35  ;;  %v2014_v58 = vsel %vm578_vm10, %v2006_v35, %v1998_v62 }
 0x7b6   : > { %v2021_v29 = vmul.f32 %v2010_v36, %v4220_v48  ;;  %v2022_v30 = vmul.f32 %v2014_v58, %v4219_v23  ;;  %2093 = vmatmul.mubr.f32.vlgmr.msra.gmra.mrb[16].mxu1 %v327_v5 }
 0x7b7   : > { %2543 = vmatpush1.bf16.msra.mxu1 %v2542_v26  ;;  %2163 = vmatprep.mubr.f32.mxu1 %v4221_v40 }
 0x7b8   : > { %v2546_v52 = vpack.c.bf16 %v2021_v29, %v2019_v1  ;;  %v2544_v37 = vpack.c.bf16 %v2022_v30, %v2020_v8 }
 0x7ba   : > { %2545 = vmatprep.subr.bf16.mxu1 %v2544_v37 }
 0x7bb   : > { %2547 = vmatpush1.bf16.msra.mxu1 %v2546_v52 }
 0x7be   : > { %2370 = vmatmul.mubr.msk.f32.vlgmr.msra.gmra.mrb[16].mxu1 %vm794_vm12, %v329_v18 }
 0x7ef   : > { %v1372_v14 = vpop.xlane.xlu1 %1371 }
 0x7f0   : > { %v1373_v53 = vrot.slane %v1372_v14, 4 }
 0x7f2   : > { %v1374_v42 = vadd.f32 %v1373_v53, %v1372_v14 }
 0x7f4   : > { %v1375_v46 = vrot.slane %v1374_v42, 2 }
 0x7f6   : > { %v1376_v16 = vadd.f32 %v1375_v46, %v1374_v42 }
 0x7f8   : > { %v1377_v34 = vrot.slane %v1376_v16, 1 }
 0x7fa   : > { %v1378_v0 = vadd.f32 %v1377_v34, %v1376_v16 }
 0x7fc   : > { %2556 = vpush %v1378_v0 }
 0x82d   : > { %s2557_s18 = spop %2556 }
 0x891   : > { %v2165_v60 = vpop.f32.mrb[16].mxu1 }
 0x892   : > { %v2550_v32 = vadd.f32 %v2165_v60, %v4223_v31  ;;  %v2167_v17 = vpop.f32.mrb[17].mxu1 }
 0x893   : > { %v2551_v11 = vadd.f32 %v2167_v17, %v4225_v6 }
 0x894   : > { %v2170_v61 = vadd.f32 2.0, %v2550_v32  ;;  %v2214_v23 = vadd.f32 %v2550_v32, %v4226_v41 }
 0x895   : > { %v2171_v33 = vadd.f32 2.0, %v2551_v11  ;;  %v2215_v63 = vadd.f32 %v2551_v11, %v4227_v21 }
 0x896   : > { %v2172_v59 = vand.u32 2147483647, %v2170_v61  ;;  %vm2186_vm0 = vcmp.ge.f32.partialorder %v2170_v61, 0.0  ;;  %v2192_v12 = vmin.f32 %v2170_v61, 0.0 }
 0x897   : > { %v2173_v13 = vand.u32 2147483647, %v2171_v33  ;;  %vm2187_vm1 = vcmp.ge.f32.partialorder %v2171_v33, 0.0  ;;  %v2193_v5 = vmin.f32 %v2171_v33, 0.0 }
 0x898   : > { %v2174_v15 = vsub.f32 0.0, %v2172_v59 }
 0x899   : > { %v2175_v7 = vsub.f32 0.0, %v2173_v13 }
 0x89a   : > { %v2176_v3 = vmul.f32 1.442695, %v2174_v15 }
 0x89b   : > { %v2178_v38 = vmul.f32 1.442695, %v2175_v7 }
 0x89c   : > { %2615 = vpow2.f32 %v2176_v3 }
 0x89d   : > { %2617 = vpow2.f32 %v2178_v38 }
 0x8a6   : > { %v2616_v39 = vpop.eup %2615 }
 0x8a7   : > { %v2618_v51 = vpop.eup %2617  ;;  %v2180_v56 = vadd.f32 1.0, %v2616_v39  ;;  %v2197_v19 = vmul.f32 -0.5, %v2616_v39  ;;  %v2200_v43 = vand.u32 2147483647, %v2616_v39 }
 0x8a8   : > { %v2181_v9 = vadd.f32 1.0, %v2618_v51  ;;  %v2206_v2 = vmul.f32 -0.5, %v2618_v51  ;;  %v2209_v28 = vand.u32 2147483647, %v2618_v51 }
 0x8a9   : > { %2619 = vrcp.f32 %v2180_v56  ;;  %v2198_v27 = vadd.f32 1.0, %v2197_v19  ;;  %vm2201_vm2 = vcmp.lt.f32.partialorder %v2200_v43, 0.0004427343 }
 0x8aa   : > { %2621 = vrcp.f32 %v2181_v9  ;;  %v2207_v24 = vadd.f32 1.0, %v2206_v2  ;;  %vm2210_vm3 = vcmp.lt.f32.partialorder %v2209_v28, 0.0004427343 }
 0x8ab   : > { %2623 = vlog2.f32 %v2180_v56  ;;  %v2199_v55 = vmul.f32 %v2616_v39, %v2198_v27 }
 0x8ac   : > { %2625 = vlog2.f32 %v2181_v9  ;;  %v2208_v50 = vmul.f32 %v2618_v51, %v2207_v24 }
 0x8b3   : > { %v2620_v49 = vpop.eup %2619 }
 0x8b4   : > { %v2622_v57 = vpop.eup %2621  ;;  %v2188_v20 = vmul.f32 %v2620_v49, %v2616_v39 }
 0x8b5   : > { %v2624_v54 = vpop.eup %2623  ;;  %v2189_v62 = vmul.f32 %v2622_v57, %v2618_v51 }
 0x8b6   : > { %v2626_v25 = vpop.eup %2625  ;;  %v2190_v44 = vsel %vm2186_vm0, %v2620_v49, %v2188_v20  ;;  %v2196_v48 = vmul.f32 0.6931472, %v2624_v54 }
 0x8b7   : > { %v2218_v10 = vrot.slane %v2190_v44, 6  ;;  %v2191_v45 = vsel %vm2187_vm1, %v2622_v57, %v2189_v62  ;;  %v2205_v4 = vmul.f32 0.6931472, %v2626_v25 }
 0x8b8   : > { %v2219_v35 = vrot.slane %v2191_v45, 6  ;;  %v2202_v26 = vsel %vm2201_vm2, %v2199_v55, %v2196_v48 }
 0x8b9   : > { %v2222_v36 = vmul.f32 %v2218_v10, %v2214_v23  ;;  %v2211_v58 = vsel %vm2210_vm3, %v2208_v50, %v2205_v4  ;;  %v2212_v1 = vsub.f32 %v2192_v12, %v2202_v26 }
 0x8ba   : > { %v2223_v8 = vmul.f32 %v2219_v35, %v2215_v63  ;;  %v2213_v29 = vsub.f32 %v2193_v5, %v2211_v58 }
 0x8bb   : > { %v2237_v30 = vsel %vm627_vm6, %v4226_v41, %v2222_v36  ;;  %v2224_v40 = vsel %vm627_vm6, %v2212_v1, 0.0 }
 0x8bc   : > { %v2238_v52 = vsel %vm627_vm6, %v4227_v21, %v2223_v8  ;;  %v2225_v37 = vsel %vm627_vm6, %v2213_v29, 0.0 }
 0x8bd   : > { %v2241_v18 = vcombine.low %v2237_v30, %v2238_v52  ;;  %v2226_v14 = vadd.f32 %v2225_v37, %v2224_v40 }
 0x8bf   : > { %2243 = vst [vmem:[%s304_s17] sm:$0xff] %v2241_v18  ;;  %2227 = vadd.xlane.f32.xlu0 %v2226_v14 }
 0x94c   : > { %v2228_v53 = vpop.xlane.xlu0 %2227 }
 0x94d   : > { %v2229_v42 = vrot.slane %v2228_v53, 4 }
 0x94f   : > { %v2230_v46 = vadd.f32 %v2229_v42, %v2228_v53 }
 0x951   : > { %v2231_v16 = vrot.slane %v2230_v46, 2 }
 0x953   : > { %v2232_v34 = vadd.f32 %v2231_v16, %v2230_v46 }
 0x955   : > { %v2233_v0 = vrot.slane %v2232_v34, 1 }
 0x957   : > { %v2234_v60 = vadd.f32 %v2233_v0, %v2232_v34 }
 0x959   : > { %2558 = vpush %v2234_v60 }
 0x98a   : > { %s2559_s20 = spop %2558 }
 0x98b   : > { %s2236_s23 = sadd.f32 %s2559_s20, %s2557_s18 }
 0x98d   : > { %v2244_v47 = vstv %s2236_s23 }
 0x98e   : > { %2245 = vst [vmem:[%s307_s22] sm:$0x1] %v2244_v47 }
 0x98f PF: > { %s18_s24 = sadd.s32 1, %s2639_s24  }
 0x990   : > { %p15_p4 = scmp.ge.s32.totalorder %s18_s24, 4  }
 0x992   :  { %17 = sbr.rel (!%p15_p4) target bundleno = 1 (0x1), region = 89 }

</bundles_post_ra>
